<compile_context>
chip_gen: v7x
topology: tpu7x:2x2x1
jax: 0.10.0
libtpu: 0.0.40
codegen_flags: <defaults>
</compile_context>

<pallas_src>
from functools import partial

import jax
import jax.numpy as jnp
from jax import lax
from jax.experimental import pallas as pl
from jax.experimental.pallas import tpu as pltpu


# dot_general dimension numbers for A @ B^T (contract last dim of both operands).
_TRANS_B_DIMS = (((1,), (1,)), ((), ()))


def attention_kernel(x_ref, w_q_ref, w_k_ref, w_v_ref, w_proj_ref, b_proj_ref,
                     o_ref,
                     q_scr, k_scr, v_scr, o_scr,
                     *, num_heads, tq):
    """One grid step == (batch b, query tile qi).

    At qi == 0 the Q/K/V projections for the whole (N, C) batch row are
    computed into bf16 VMEM scratch (three separate matmuls, each cast to
    bf16 right away).  Every qi step then runs per-head attention for its
    (TQ, N) score tile and the output projection for its (TQ, C) slab.
    """
    qi = pl.program_id(1)
    H = num_heads
    N, C = k_scr.shape
    d = C // H

    # --- Q/K/V projection, once per batch row (qi == 0) ---------------------
    @pl.when(qi == 0)
    def _():
        x = x_ref[0].astype(jnp.bfloat16)                        # (N, C) bf16
        # Softmax scale is pre-folded into w_q by the wrapper.
        q_scr[...] = jnp.dot(x, w_q_ref[...],
                             preferred_element_type=jnp.float32
                             ).astype(jnp.bfloat16)
        k_scr[...] = jnp.dot(x, w_k_ref[...],
                             preferred_element_type=jnp.float32
                             ).astype(jnp.bfloat16)
        v_scr[...] = jnp.dot(x, w_v_ref[...],
                             preferred_element_type=jnp.float32
                             ).astype(jnp.bfloat16)

    # --- per-head attention for this query tile -----------------------------
    row0 = pl.multiple_of(qi * tq, tq)
    q_tile = q_scr[pl.ds(row0, tq), :]                           # (TQ, C) bf16

    # Static head loop with static lane slices; each head's (TQ, N) score /
    # prob matrices are consumed by a scratch-column store, so nothing is
    # carried to the end of the loop (no concatenate, no list of partials).
    # TODO(synk): at real ViT sizes, if vreg pressure shows up, move heads to
    # an innermost grid axis (head-major weight layout) to hard-bound live
    # ranges; at long N (>~512 on v7x, >~1024 on v6e) switch to a KV-tiled
    # online-softmax (flash) accumulation.
    for h in range(H):
        lo = h * d
        hi = lo + d
        qh = q_tile[:, lo:hi]                                    # (TQ, d), pre-scaled
        kh = k_scr[:, lo:hi]                                     # (N, d)
        vh = v_scr[:, lo:hi]                                     # (N, d)

        # scores = q @ k^T with f32 accumulation on the MXU.
        s = lax.dot_general(qh, kh, _TRANS_B_DIMS,
                            preferred_element_type=jnp.float32)  # (TQ, N)
        m = jnp.max(s, axis=-1, keepdims=True)                   # stable softmax
        p = jnp.exp(s - m)                                       # (TQ, N) unnormalized
        l = jnp.sum(p, axis=-1, keepdims=True)                   # (TQ, 1)

        # P @ V first (bf16 MXU), then normalize the small (TQ, d) result
        # with an EUP reciprocal instead of dividing the (TQ, N) matrix.
        oh = jnp.dot(p.astype(jnp.bfloat16), vh,
                     preferred_element_type=jnp.float32)         # (TQ, d) f32
        o_scr[:, lo:hi] = oh * pl.reciprocal(l, approx=True)

    # --- output projection (single full-contraction matmul) + bias ----------
    y = jnp.dot(o_scr[...].astype(jnp.bfloat16), w_proj_ref[...],
                preferred_element_type=jnp.float32)              # (TQ, C) f32
    y = y + b_proj_ref[...]                                      # (1, C) broadcast
    o_ref[0] = y.astype(o_ref.dtype)                             # lane-dense store


def _pick_query_tile(n):
    # Biggest MXU/lane-friendly query tile that divides N; full N when the
    # sequence is short (grid then collapses to one query step per batch).
    for tq in (512, 256, 128):
        if n % tq == 0 and n > tq:
            return tq
    return n


def attention_pallas(x, w_qkv, w_proj, b_proj, *, num_heads):
    B, N, C = x.shape
    assert C % num_heads == 0
    scale = (C // num_heads) ** -0.5
    tq = _pick_query_tile(N)
    n_q = N // tq

    # Fold the softmax scale into the q-projection weights (exact when
    # head_dim is a power of four; otherwise one extra benign rounding),
    # split the fused qkv weight into three (C, C) matrices, ship in bf16.
    w_q = (w_qkv[:, 0 * C:1 * C] * scale).astype(jnp.bfloat16)
    w_k = w_qkv[:, 1 * C:2 * C].astype(jnp.bfloat16)
    w_v = w_qkv[:, 2 * C:3 * C].astype(jnp.bfloat16)
    w_proj_bf16 = w_proj.astype(jnp.bfloat16)
    b_proj_f32 = b_proj.reshape(1, C).astype(jnp.float32)

    kernel = partial(attention_kernel, num_heads=num_heads, tq=tq)

    grid_spec = pltpu.PrefetchScalarGridSpec(
        num_scalar_prefetch=0,
        grid=(B, n_q),
        in_specs=[
            # Full (N, C) batch row; block index is constant in qi so it is
            # only re-DMA'd when the batch changes.
            pl.BlockSpec((1, N, C), lambda b, q: (b, 0, 0)),
            # Grid-invariant weights (constant block index -> fetched once).
            # TODO(synk): on v7x with large C, single-buffer these
            # (pipeline_mode=pl.Buffered(1) or a one-shot manual DMA) to
            # avoid double-buffered weight residency in 64 MiB VMEM.
            pl.BlockSpec((C, C), lambda b, q: (0, 0)),            # w_q (scaled)
            pl.BlockSpec((C, C), lambda b, q: (0, 0)),            # w_k
            pl.BlockSpec((C, C), lambda b, q: (0, 0)),            # w_v
            pl.BlockSpec((C, C), lambda b, q: (0, 0)),            # w_proj
            pl.BlockSpec((1, C), lambda b, q: (0, 0)),            # b_proj
        ],
        out_specs=pl.BlockSpec((1, tq, C), lambda b, q: (b, q, 0)),
        scratch_shapes=[
            pltpu.VMEM((N, C), jnp.bfloat16),   # q (pre-scaled), whole batch row
            pltpu.VMEM((N, C), jnp.bfloat16),   # k
            pltpu.VMEM((N, C), jnp.bfloat16),   # v
            pltpu.VMEM((tq, C), jnp.float32),   # per-head attention output slab
        ],
    )

    return pl.pallas_call(
        kernel,
        out_shape=jax.ShapeDtypeStruct((B, N, C), x.dtype),
        grid_spec=grid_spec,
        compiler_params=pltpu.CompilerParams(
            dimension_semantics=("parallel", "arbitrary"),
            # 48 MiB is safe on every generation (v7x has only 64 MiB
            # physical); raise toward ~96 MiB on v5e/v6e for larger tiles.
            vmem_limit_bytes=48 * 1024 * 1024),
    )(x, w_q, w_k, w_v, w_proj_bf16, b_proj_f32)


def attention_ref(x, w_qkv, w_proj, b_proj, *, num_heads):
    # Pure-JAX reference mirroring the PyTorch forward, for verification.
    B, N, C = x.shape
    d = C // num_heads
    scale = d ** -0.5
    qkv = x @ w_qkv                                             # (B, N, 3C)
    qkv = qkv.reshape(B, N, 3, num_heads, d).transpose(2, 0, 3, 1, 4)
    q, k, v = qkv[0], qkv[1], qkv[2]                            # (B, H, N, d)
    attn = (q @ jnp.swapaxes(k, -2, -1)) * scale                # (B, H, N, N)
    attn = jax.nn.softmax(attn, axis=-1)
    out = (attn @ v).transpose(0, 2, 1, 3).reshape(B, N, C)
    return out @ w_proj + b_proj.reshape(1, 1, C)


if __name__ == "__main__":
    B, N, C, H = 2, 8, 32, 8

    key = jax.random.PRNGKey(0)
    kx, kqkv, kproj, kb = jax.random.split(key, 4)

    x = jax.random.normal(kx, (B, N, C), dtype=jnp.float32)
    # Deterministic parameter init (synthetic; no checkpoint load).
    w_qkv = jax.random.normal(kqkv, (C, 3 * C), dtype=jnp.float32) * 0.02
    w_proj = jax.random.normal(kproj, (C, C), dtype=jnp.float32) * 0.02
    b_proj = jax.random.normal(kb, (1, C), dtype=jnp.float32) * 0.02

    out = attention_pallas(x, w_qkv, w_proj, b_proj, num_heads=H)
    out = jax.block_until_ready(out)

    ref = attention_ref(x, w_qkv, w_proj, b_proj, num_heads=H)
    assert out.shape == (B, N, C)
    # bf16 MXU operands (f32 accumulation) -> tolerance loosened vs f32 reference.
    assert jnp.allclose(out, ref, atol=1e-2, rtol=1e-2), "mismatch vs reference"

    print("KERNEL_OK")
</pallas_src>

<mosaic_0001>
module attributes {stable_mosaic.version = 11 : i64} {
  func.func @attention_kernel(%arg0: i32, %arg1: i32, %arg2: memref<1x8x32xf32, #tpu.memory_space<vmem>>, %arg3: memref<32x32xbf16, #tpu.memory_space<vmem>>, %arg4: memref<32x32xbf16, #tpu.memory_space<vmem>>, %arg5: memref<32x32xbf16, #tpu.memory_space<vmem>>, %arg6: memref<32x32xbf16, #tpu.memory_space<vmem>>, %arg7: memref<1x32xf32, #tpu.memory_space<vmem>>, %arg8: memref<1x8x32xf32, #tpu.memory_space<vmem>>, %arg9: memref<8x32xbf16, #tpu.memory_space<vmem>>, %arg10: memref<8x32xbf16, #tpu.memory_space<vmem>>, %arg11: memref<8x32xbf16, #tpu.memory_space<vmem>>, %arg12: memref<8x32xf32, #tpu.memory_space<vmem>>) attributes {dimension_semantics = [#tpu.dimension_semantics<parallel>, #tpu.dimension_semantics<arbitrary>], iteration_bounds = array<i64: 2, 1>, scalar_prefetch = 0 : i64, scratch_operands = 4 : i64, tpu.core_type = #tpu.core_type<tc>, window_params = [{transform_indices = @transform_0, window_bounds = array<i64: 1, 8, 32>}, {pipeline_mode = #tpu.pipeline_mode<synchronous>, transform_indices = @transform_1, window_bounds = array<i64: 32, 32>}, {pipeline_mode = #tpu.pipeline_mode<synchronous>, transform_indices = @transform_2, window_bounds = array<i64: 32, 32>}, {pipeline_mode = #tpu.pipeline_mode<synchronous>, transform_indices = @transform_3, window_bounds = array<i64: 32, 32>}, {pipeline_mode = #tpu.pipeline_mode<synchronous>, transform_indices = @transform_4, window_bounds = array<i64: 32, 32>}, {pipeline_mode = #tpu.pipeline_mode<synchronous>, transform_indices = @transform_5, window_bounds = array<i64: 1, 32>}, {transform_indices = @transform_6, window_bounds = array<i64: 1, 8, 32>}]} {
    %c0_i32 = arith.constant 0 : i32
    %0 = arith.cmpi eq, %arg1, %c0_i32 : i32
    %1 = arith.extui %0 : i1 to i32
    %c0_i32_0 = arith.constant 0 : i32
    %2 = arith.cmpi ne, %1, %c0_i32_0 : i32
    scf.if %2 {
      %c0_83 = arith.constant 0 : index
      %c0_84 = arith.constant 0 : index
      %c0_85 = arith.constant 0 : index
      %153 = vector.load %arg2[%c0_83, %c0_84, %c0_85] : memref<1x8x32xf32, #tpu.memory_space<vmem>>, vector<1x8x32xf32>
      %154 = vector.shape_cast %153 : vector<1x8x32xf32> to vector<8x32xf32>
      %155 = arith.truncf %154 : vector<8x32xf32> to vector<8x32xbf16>
      %c0_86 = arith.constant 0 : index
      %c0_87 = arith.constant 0 : index
      %156 = vector.load %arg3[%c0_86, %c0_87] : memref<32x32xbf16, #tpu.memory_space<vmem>>, vector<32x32xbf16>
      %cst_88 = arith.constant dense<0.000000e+00> : vector<8x32xf32>
      %157 = tpu.matmul %155, %156, %cst_88 {dimension_numbers = #tpu.dot_dimension_numbers<[1], [0], [0], [1], [0, 0, 1, 1], [], []>} : vector<8x32xbf16>, vector<32x32xbf16>, vector<8x32xf32> -> vector<8x32xf32>
      %158 = arith.truncf %157 : vector<8x32xf32> to vector<8x32xbf16>
      %c0_89 = arith.constant 0 : index
      %c0_90 = arith.constant 0 : index
      %159 = vector.load %arg9[%c0_89, %c0_90] : memref<8x32xbf16, #tpu.memory_space<vmem>>, vector<8x32xbf16>
      tpu.vector_store %arg9[%c0_89, %c0_90], %158 {strides = array<i32>} : memref<8x32xbf16, #tpu.memory_space<vmem>>, vector<8x32xbf16>,
      %c0_91 = arith.constant 0 : index
      %c0_92 = arith.constant 0 : index
      %160 = vector.load %arg4[%c0_91, %c0_92] : memref<32x32xbf16, #tpu.memory_space<vmem>>, vector<32x32xbf16>
      %cst_93 = arith.constant dense<0.000000e+00> : vector<8x32xf32>
      %161 = tpu.matmul %155, %160, %cst_93 {dimension_numbers = #tpu.dot_dimension_numbers<[1], [0], [0], [1], [0, 0, 1, 1], [], []>} : vector<8x32xbf16>, vector<32x32xbf16>, vector<8x32xf32> -> vector<8x32xf32>
      %162 = arith.truncf %161 : vector<8x32xf32> to vector<8x32xbf16>
      %c0_94 = arith.constant 0 : index
      %c0_95 = arith.constant 0 : index
      %163 = vector.load %arg10[%c0_94, %c0_95] : memref<8x32xbf16, #tpu.memory_space<vmem>>, vector<8x32xbf16>
      tpu.vector_store %arg10[%c0_94, %c0_95], %162 {strides = array<i32>} : memref<8x32xbf16, #tpu.memory_space<vmem>>, vector<8x32xbf16>,
      %c0_96 = arith.constant 0 : index
      %c0_97 = arith.constant 0 : index
      %164 = vector.load %arg5[%c0_96, %c0_97] : memref<32x32xbf16, #tpu.memory_space<vmem>>, vector<32x32xbf16>
      %cst_98 = arith.constant dense<0.000000e+00> : vector<8x32xf32>
      %165 = tpu.matmul %155, %164, %cst_98 {dimension_numbers = #tpu.dot_dimension_numbers<[1], [0], [0], [1], [0, 0, 1, 1], [], []>} : vector<8x32xbf16>, vector<32x32xbf16>, vector<8x32xf32> -> vector<8x32xf32>
      %166 = arith.truncf %165 : vector<8x32xf32> to vector<8x32xbf16>
      %c0_99 = arith.constant 0 : index
      %c0_100 = arith.constant 0 : index
      %167 = vector.load %arg11[%c0_99, %c0_100] : memref<8x32xbf16, #tpu.memory_space<vmem>>, vector<8x32xbf16>
      tpu.vector_store %arg11[%c0_99, %c0_100], %166 {strides = array<i32>} : memref<8x32xbf16, #tpu.memory_space<vmem>>, vector<8x32xbf16>,
    } else {
    }
    %c8_i32 = arith.constant 8 : i32
    %3 = arith.muli %arg1, %c8_i32 : i32
    %4 = tpu.assume_multiple %3, 8 : i32
    %5 = arith.index_cast %4 : i32 to index
    %c0 = arith.constant 0 : index
    %6 = vector.load %arg9[%5, %c0] : memref<8x32xbf16, #tpu.memory_space<vmem>>, vector<8x32xbf16>
    %7 = vector.extract_strided_slice %6 {offsets = [0, 0], sizes = [8, 4], strides = [1, 1]} : vector<8x32xbf16> to vector<8x4xbf16>
    %c0_1 = arith.constant 0 : index
    %c0_2 = arith.constant 0 : index
    %8 = vector.load %arg10[%c0_1, %c0_2] : memref<8x32xbf16, #tpu.memory_space<vmem>>, vector<8x4xbf16>
    %c0_3 = arith.constant 0 : index
    %c0_4 = arith.constant 0 : index
    %9 = vector.load %arg11[%c0_3, %c0_4] : memref<8x32xbf16, #tpu.memory_space<vmem>>, vector<8x4xbf16>
    %cst = arith.constant dense<0.000000e+00> : vector<8x8xf32>
    %10 = tpu.matmul %7, %8, %cst {dimension_numbers = #tpu.dot_dimension_numbers<[1], [1], [0], [0], [0, 0, 1, 0], [], []>} : vector<8x4xbf16>, vector<8x4xbf16>, vector<8x8xf32> -> vector<8x8xf32>
    %cst_5 = arith.constant dense<0xFF800000> : vector<8xf32>
    %11 = vector.multi_reduction <maximumf>, %10, %cst_5 [1] : vector<8x8xf32> to vector<8xf32>
    %12 = vector.shape_cast %11 : vector<8xf32> to vector<8x1xf32>
    %13 = vector.broadcast %12 : vector<8x1xf32> to vector<8x8xf32>
    %14 = arith.subf %10, %13 : vector<8x8xf32>
    %15 = math.exp %14 : vector<8x8xf32>
    %cst_6 = arith.constant dense<0.000000e+00> : vector<8xf32>
    %16 = vector.multi_reduction <add>, %15, %cst_6 [1] : vector<8x8xf32> to vector<8xf32>
    %17 = vector.shape_cast %16 : vector<8xf32> to vector<8x1xf32>
    %18 = arith.truncf %15 : vector<8x8xf32> to vector<8x8xbf16>
    %cst_7 = arith.constant dense<0.000000e+00> : vector<8x4xf32>
    %19 = tpu.matmul %18, %9, %cst_7 {dimension_numbers = #tpu.dot_dimension_numbers<[1], [0], [0], [1], [0, 0, 1, 1], [], []>} : vector<8x8xbf16>, vector<8x4xbf16>, vector<8x4xf32> -> vector<8x4xf32>
    %20 = tpu.reciprocal %17 {approx = true} : vector<8x1xf32> -> vector<8x1xf32>
    %21 = vector.broadcast %20 : vector<8x1xf32> to vector<8x4xf32>
    %22 = arith.mulf %19, %21 : vector<8x4xf32>
    %c0_8 = arith.constant 0 : index
    %c0_9 = arith.constant 0 : index
    %23 = vector.load %arg12[%c0_8, %c0_9] : memref<8x32xf32, #tpu.memory_space<vmem>>, vector<8x4xf32>
    tpu.vector_store %arg12[%c0_8, %c0_9], %22 {strides = array<i32>} : memref<8x32xf32, #tpu.memory_space<vmem>>, vector<8x4xf32>,
    %24 = vector.extract_strided_slice %6 {offsets = [0, 4], sizes = [8, 4], strides = [1, 1]} : vector<8x32xbf16> to vector<8x4xbf16>
    %c0_10 = arith.constant 0 : index
    %c4 = arith.constant 4 : index
    %25 = vector.load %arg10[%c0_10, %c4] : memref<8x32xbf16, #tpu.memory_space<vmem>>, vector<8x4xbf16>
    %c0_11 = arith.constant 0 : index
    %c4_12 = arith.constant 4 : index
    %26 = vector.load %arg11[%c0_11, %c4_12] : memref<8x32xbf16, #tpu.memory_space<vmem>>, vector<8x4xbf16>
    %cst_13 = arith.constant dense<0.000000e+00> : vector<8x8xf32>
    %27 = tpu.matmul %24, %25, %cst_13 {dimension_numbers = #tpu.dot_dimension_numbers<[1], [1], [0], [0], [0, 0, 1, 0], [], []>} : vector<8x4xbf16>, vector<8x4xbf16>, vector<8x8xf32> -> vector<8x8xf32>
    %cst_14 = arith.constant dense<0xFF800000> : vector<8xf32>
    %28 = vector.multi_reduction <maximumf>, %27, %cst_14 [1] : vector<8x8xf32> to vector<8xf32>
    %29 = vector.shape_cast %28 : vector<8xf32> to vector<8x1xf32>
    %30 = vector.broadcast %29 : vector<8x1xf32> to vector<8x8xf32>
    %31 = arith.subf %27, %30 : vector<8x8xf32>
    %32 = math.exp %31 : vector<8x8xf32>
    %cst_15 = arith.constant dense<0.000000e+00> : vector<8xf32>
    %33 = vector.multi_reduction <add>, %32, %cst_15 [1] : vector<8x8xf32> to vector<8xf32>
    %34 = vector.shape_cast %33 : vector<8xf32> to vector<8x1xf32>
    %35 = arith.truncf %32 : vector<8x8xf32> to vector<8x8xbf16>
    %cst_16 = arith.constant dense<0.000000e+00> : vector<8x4xf32>
    %36 = tpu.matmul %35, %26, %cst_16 {dimension_numbers = #tpu.dot_dimension_numbers<[1], [0], [0], [1], [0, 0, 1, 1], [], []>} : vector<8x8xbf16>, vector<8x4xbf16>, vector<8x4xf32> -> vector<8x4xf32>
    %37 = tpu.reciprocal %34 {approx = true} : vector<8x1xf32> -> vector<8x1xf32>
    %38 = vector.broadcast %37 : vector<8x1xf32> to vector<8x4xf32>
    %39 = arith.mulf %36, %38 : vector<8x4xf32>
    %c0_17 = arith.constant 0 : index
    %c4_18 = arith.constant 4 : index
    %40 = vector.load %arg12[%c0_17, %c4_18] : memref<8x32xf32, #tpu.memory_space<vmem>>, vector<8x4xf32>
    tpu.vector_store %arg12[%c0_17, %c4_18], %39 {strides = array<i32>} : memref<8x32xf32, #tpu.memory_space<vmem>>, vector<8x4xf32>,
    %41 = vector.extract_strided_slice %6 {offsets = [0, 8], sizes = [8, 4], strides = [1, 1]} : vector<8x32xbf16> to vector<8x4xbf16>
    %c0_19 = arith.constant 0 : index
    %c8 = arith.constant 8 : index
    %42 = vector.load %arg10[%c0_19, %c8] : memref<8x32xbf16, #tpu.memory_space<vmem>>, vector<8x4xbf16>
    %c0_20 = arith.constant 0 : index
    %c8_21 = arith.constant 8 : index
    %43 = vector.load %arg11[%c0_20, %c8_21] : memref<8x32xbf16, #tpu.memory_space<vmem>>, vector<8x4xbf16>
    %cst_22 = arith.constant dense<0.000000e+00> : vector<8x8xf32>
    %44 = tpu.matmul %41, %42, %cst_22 {dimension_numbers = #tpu.dot_dimension_numbers<[1], [1], [0], [0], [0, 0, 1, 0], [], []>} : vector<8x4xbf16>, vector<8x4xbf16>, vector<8x8xf32> -> vector<8x8xf32>
    %cst_23 = arith.constant dense<0xFF800000> : vector<8xf32>
    %45 = vector.multi_reduction <maximumf>, %44, %cst_23 [1] : vector<8x8xf32> to vector<8xf32>
    %46 = vector.shape_cast %45 : vector<8xf32> to vector<8x1xf32>
    %47 = vector.broadcast %46 : vector<8x1xf32> to vector<8x8xf32>
    %48 = arith.subf %44, %47 : vector<8x8xf32>
    %49 = math.exp %48 : vector<8x8xf32>
    %cst_24 = arith.constant dense<0.000000e+00> : vector<8xf32>
    %50 = vector.multi_reduction <add>, %49, %cst_24 [1] : vector<8x8xf32> to vector<8xf32>
    %51 = vector.shape_cast %50 : vector<8xf32> to vector<8x1xf32>
    %52 = arith.truncf %49 : vector<8x8xf32> to vector<8x8xbf16>
    %cst_25 = arith.constant dense<0.000000e+00> : vector<8x4xf32>
    %53 = tpu.matmul %52, %43, %cst_25 {dimension_numbers = #tpu.dot_dimension_numbers<[1], [0], [0], [1], [0, 0, 1, 1], [], []>} : vector<8x8xbf16>, vector<8x4xbf16>, vector<8x4xf32> -> vector<8x4xf32>
    %54 = tpu.reciprocal %51 {approx = true} : vector<8x1xf32> -> vector<8x1xf32>
    %55 = vector.broadcast %54 : vector<8x1xf32> to vector<8x4xf32>
    %56 = arith.mulf %53, %55 : vector<8x4xf32>
    %c0_26 = arith.constant 0 : index
    %c8_27 = arith.constant 8 : index
    %57 = vector.load %arg12[%c0_26, %c8_27] : memref<8x32xf32, #tpu.memory_space<vmem>>, vector<8x4xf32>
    tpu.vector_store %arg12[%c0_26, %c8_27], %56 {strides = array<i32>} : memref<8x32xf32, #tpu.memory_space<vmem>>, vector<8x4xf32>,
    %58 = vector.extract_strided_slice %6 {offsets = [0, 12], sizes = [8, 4], strides = [1, 1]} : vector<8x32xbf16> to vector<8x4xbf16>
    %c0_28 = arith.constant 0 : index
    %c12 = arith.constant 12 : index
    %59 = vector.load %arg10[%c0_28, %c12] : memref<8x32xbf16, #tpu.memory_space<vmem>>, vector<8x4xbf16>
    %c0_29 = arith.constant 0 : index
    %c12_30 = arith.constant 12 : index
    %60 = vector.load %arg11[%c0_29, %c12_30] : memref<8x32xbf16, #tpu.memory_space<vmem>>, vector<8x4xbf16>
    %cst_31 = arith.constant dense<0.000000e+00> : vector<8x8xf32>
    %61 = tpu.matmul %58, %59, %cst_31 {dimension_numbers = #tpu.dot_dimension_numbers<[1], [1], [0], [0], [0, 0, 1, 0], [], []>} : vector<8x4xbf16>, vector<8x4xbf16>, vector<8x8xf32> -> vector<8x8xf32>
    %cst_32 = arith.constant dense<0xFF800000> : vector<8xf32>
    %62 = vector.multi_reduction <maximumf>, %61, %cst_32 [1] : vector<8x8xf32> to vector<8xf32>
    %63 = vector.shape_cast %62 : vector<8xf32> to vector<8x1xf32>
    %64 = vector.broadcast %63 : vector<8x1xf32> to vector<8x8xf32>
    %65 = arith.subf %61, %64 : vector<8x8xf32>
    %66 = math.exp %65 : vector<8x8xf32>
    %cst_33 = arith.constant dense<0.000000e+00> : vector<8xf32>
    %67 = vector.multi_reduction <add>, %66, %cst_33 [1] : vector<8x8xf32> to vector<8xf32>
    %68 = vector.shape_cast %67 : vector<8xf32> to vector<8x1xf32>
    %69 = arith.truncf %66 : vector<8x8xf32> to vector<8x8xbf16>
    %cst_34 = arith.constant dense<0.000000e+00> : vector<8x4xf32>
    %70 = tpu.matmul %69, %60, %cst_34 {dimension_numbers = #tpu.dot_dimension_numbers<[1], [0], [0], [1], [0, 0, 1, 1], [], []>} : vector<8x8xbf16>, vector<8x4xbf16>, vector<8x4xf32> -> vector<8x4xf32>
    %71 = tpu.reciprocal %68 {approx = true} : vector<8x1xf32> -> vector<8x1xf32>
    %72 = vector.broadcast %71 : vector<8x1xf32> to vector<8x4xf32>
    %73 = arith.mulf %70, %72 : vector<8x4xf32>
    %c0_35 = arith.constant 0 : index
    %c12_36 = arith.constant 12 : index
    %74 = vector.load %arg12[%c0_35, %c12_36] : memref<8x32xf32, #tpu.memory_space<vmem>>, vector<8x4xf32>
    tpu.vector_store %arg12[%c0_35, %c12_36], %73 {strides = array<i32>} : memref<8x32xf32, #tpu.memory_space<vmem>>, vector<8x4xf32>,
    %75 = vector.extract_strided_slice %6 {offsets = [0, 16], sizes = [8, 4], strides = [1, 1]} : vector<8x32xbf16> to vector<8x4xbf16>
    %c0_37 = arith.constant 0 : index
    %c16 = arith.constant 16 : index
    %76 = vector.load %arg10[%c0_37, %c16] : memref<8x32xbf16, #tpu.memory_space<vmem>>, vector<8x4xbf16>
    %c0_38 = arith.constant 0 : index
    %c16_39 = arith.constant 16 : index
    %77 = vector.load %arg11[%c0_38, %c16_39] : memref<8x32xbf16, #tpu.memory_space<vmem>>, vector<8x4xbf16>
    %cst_40 = arith.constant dense<0.000000e+00> : vector<8x8xf32>
    %78 = tpu.matmul %75, %76, %cst_40 {dimension_numbers = #tpu.dot_dimension_numbers<[1], [1], [0], [0], [0, 0, 1, 0], [], []>} : vector<8x4xbf16>, vector<8x4xbf16>, vector<8x8xf32> -> vector<8x8xf32>
    %cst_41 = arith.constant dense<0xFF800000> : vector<8xf32>
    %79 = vector.multi_reduction <maximumf>, %78, %cst_41 [1] : vector<8x8xf32> to vector<8xf32>
    %80 = vector.shape_cast %79 : vector<8xf32> to vector<8x1xf32>
    %81 = vector.broadcast %80 : vector<8x1xf32> to vector<8x8xf32>
    %82 = arith.subf %78, %81 : vector<8x8xf32>
    %83 = math.exp %82 : vector<8x8xf32>
    %cst_42 = arith.constant dense<0.000000e+00> : vector<8xf32>
    %84 = vector.multi_reduction <add>, %83, %cst_42 [1] : vector<8x8xf32> to vector<8xf32>
    %85 = vector.shape_cast %84 : vector<8xf32> to vector<8x1xf32>
    %86 = arith.truncf %83 : vector<8x8xf32> to vector<8x8xbf16>
    %cst_43 = arith.constant dense<0.000000e+00> : vector<8x4xf32>
    %87 = tpu.matmul %86, %77, %cst_43 {dimension_numbers = #tpu.dot_dimension_numbers<[1], [0], [0], [1], [0, 0, 1, 1], [], []>} : vector<8x8xbf16>, vector<8x4xbf16>, vector<8x4xf32> -> vector<8x4xf32>
    %88 = tpu.reciprocal %85 {approx = true} : vector<8x1xf32> -> vector<8x1xf32>
    %89 = vector.broadcast %88 : vector<8x1xf32> to vector<8x4xf32>
    %90 = arith.mulf %87, %89 : vector<8x4xf32>
    %c0_44 = arith.constant 0 : index
    %c16_45 = arith.constant 16 : index
    %91 = vector.load %arg12[%c0_44, %c16_45] : memref<8x32xf32, #tpu.memory_space<vmem>>, vector<8x4xf32>
    tpu.vector_store %arg12[%c0_44, %c16_45], %90 {strides = array<i32>} : memref<8x32xf32, #tpu.memory_space<vmem>>, vector<8x4xf32>,
    %92 = vector.extract_strided_slice %6 {offsets = [0, 20], sizes = [8, 4], strides = [1, 1]} : vector<8x32xbf16> to vector<8x4xbf16>
    %c0_46 = arith.constant 0 : index
    %c20 = arith.constant 20 : index
    %93 = vector.load %arg10[%c0_46, %c20] : memref<8x32xbf16, #tpu.memory_space<vmem>>, vector<8x4xbf16>
    %c0_47 = arith.constant 0 : index
    %c20_48 = arith.constant 20 : index
    %94 = vector.load %arg11[%c0_47, %c20_48] : memref<8x32xbf16, #tpu.memory_space<vmem>>, vector<8x4xbf16>
    %cst_49 = arith.constant dense<0.000000e+00> : vector<8x8xf32>
    %95 = tpu.matmul %92, %93, %cst_49 {dimension_numbers = #tpu.dot_dimension_numbers<[1], [1], [0], [0], [0, 0, 1, 0], [], []>} : vector<8x4xbf16>, vector<8x4xbf16>, vector<8x8xf32> -> vector<8x8xf32>
    %cst_50 = arith.constant dense<0xFF800000> : vector<8xf32>
    %96 = vector.multi_reduction <maximumf>, %95, %cst_50 [1] : vector<8x8xf32> to vector<8xf32>
    %97 = vector.shape_cast %96 : vector<8xf32> to vector<8x1xf32>
    %98 = vector.broadcast %97 : vector<8x1xf32> to vector<8x8xf32>
    %99 = arith.subf %95, %98 : vector<8x8xf32>
    %100 = math.exp %99 : vector<8x8xf32>
    %cst_51 = arith.constant dense<0.000000e+00> : vector<8xf32>
    %101 = vector.multi_reduction <add>, %100, %cst_51 [1] : vector<8x8xf32> to vector<8xf32>
    %102 = vector.shape_cast %101 : vector<8xf32> to vector<8x1xf32>
    %103 = arith.truncf %100 : vector<8x8xf32> to vector<8x8xbf16>
    %cst_52 = arith.constant dense<0.000000e+00> : vector<8x4xf32>
    %104 = tpu.matmul %103, %94, %cst_52 {dimension_numbers = #tpu.dot_dimension_numbers<[1], [0], [0], [1], [0, 0, 1, 1], [], []>} : vector<8x8xbf16>, vector<8x4xbf16>, vector<8x4xf32> -> vector<8x4xf32>
    %105 = tpu.reciprocal %102 {approx = true} : vector<8x1xf32> -> vector<8x1xf32>
    %106 = vector.broadcast %105 : vector<8x1xf32> to vector<8x4xf32>
    %107 = arith.mulf %104, %106 : vector<8x4xf32>
    %c0_53 = arith.constant 0 : index
    %c20_54 = arith.constant 20 : index
    %108 = vector.load %arg12[%c0_53, %c20_54] : memref<8x32xf32, #tpu.memory_space<vmem>>, vector<8x4xf32>
    tpu.vector_store %arg12[%c0_53, %c20_54], %107 {strides = array<i32>} : memref<8x32xf32, #tpu.memory_space<vmem>>, vector<8x4xf32>,
    %109 = vector.extract_strided_slice %6 {offsets = [0, 24], sizes = [8, 4], strides = [1, 1]} : vector<8x32xbf16> to vector<8x4xbf16>
    %c0_55 = arith.constant 0 : index
    %c24 = arith.constant 24 : index
    %110 = vector.load %arg10[%c0_55, %c24] : memref<8x32xbf16, #tpu.memory_space<vmem>>, vector<8x4xbf16>
    %c0_56 = arith.constant 0 : index
    %c24_57 = arith.constant 24 : index
    %111 = vector.load %arg11[%c0_56, %c24_57] : memref<8x32xbf16, #tpu.memory_space<vmem>>, vector<8x4xbf16>
    %cst_58 = arith.constant dense<0.000000e+00> : vector<8x8xf32>
    %112 = tpu.matmul %109, %110, %cst_58 {dimension_numbers = #tpu.dot_dimension_numbers<[1], [1], [0], [0], [0, 0, 1, 0], [], []>} : vector<8x4xbf16>, vector<8x4xbf16>, vector<8x8xf32> -> vector<8x8xf32>
    %cst_59 = arith.constant dense<0xFF800000> : vector<8xf32>
    %113 = vector.multi_reduction <maximumf>, %112, %cst_59 [1] : vector<8x8xf32> to vector<8xf32>
    %114 = vector.shape_cast %113 : vector<8xf32> to vector<8x1xf32>
    %115 = vector.broadcast %114 : vector<8x1xf32> to vector<8x8xf32>
    %116 = arith.subf %112, %115 : vector<8x8xf32>
    %117 = math.exp %116 : vector<8x8xf32>
    %cst_60 = arith.constant dense<0.000000e+00> : vector<8xf32>
    %118 = vector.multi_reduction <add>, %117, %cst_60 [1] : vector<8x8xf32> to vector<8xf32>
    %119 = vector.shape_cast %118 : vector<8xf32> to vector<8x1xf32>
    %120 = arith.truncf %117 : vector<8x8xf32> to vector<8x8xbf16>
    %cst_61 = arith.constant dense<0.000000e+00> : vector<8x4xf32>
    %121 = tpu.matmul %120, %111, %cst_61 {dimension_numbers = #tpu.dot_dimension_numbers<[1], [0], [0], [1], [0, 0, 1, 1], [], []>} : vector<8x8xbf16>, vector<8x4xbf16>, vector<8x4xf32> -> vector<8x4xf32>
    %122 = tpu.reciprocal %119 {approx = true} : vector<8x1xf32> -> vector<8x1xf32>
    %123 = vector.broadcast %122 : vector<8x1xf32> to vector<8x4xf32>
    %124 = arith.mulf %121, %123 : vector<8x4xf32>
    %c0_62 = arith.constant 0 : index
    %c24_63 = arith.constant 24 : index
    %125 = vector.load %arg12[%c0_62, %c24_63] : memref<8x32xf32, #tpu.memory_space<vmem>>, vector<8x4xf32>
    tpu.vector_store %arg12[%c0_62, %c24_63], %124 {strides = array<i32>} : memref<8x32xf32, #tpu.memory_space<vmem>>, vector<8x4xf32>,
    %126 = vector.extract_strided_slice %6 {offsets = [0, 28], sizes = [8, 4], strides = [1, 1]} : vector<8x32xbf16> to vector<8x4xbf16>
    %c0_64 = arith.constant 0 : index
    %c28 = arith.constant 28 : index
    %127 = vector.load %arg10[%c0_64, %c28] : memref<8x32xbf16, #tpu.memory_space<vmem>>, vector<8x4xbf16>
    %c0_65 = arith.constant 0 : index
    %c28_66 = arith.constant 28 : index
    %128 = vector.load %arg11[%c0_65, %c28_66] : memref<8x32xbf16, #tpu.memory_space<vmem>>, vector<8x4xbf16>
    %cst_67 = arith.constant dense<0.000000e+00> : vector<8x8xf32>
    %129 = tpu.matmul %126, %127, %cst_67 {dimension_numbers = #tpu.dot_dimension_numbers<[1], [1], [0], [0], [0, 0, 1, 0], [], []>} : vector<8x4xbf16>, vector<8x4xbf16>, vector<8x8xf32> -> vector<8x8xf32>
    %cst_68 = arith.constant dense<0xFF800000> : vector<8xf32>
    %130 = vector.multi_reduction <maximumf>, %129, %cst_68 [1] : vector<8x8xf32> to vector<8xf32>
    %131 = vector.shape_cast %130 : vector<8xf32> to vector<8x1xf32>
    %132 = vector.broadcast %131 : vector<8x1xf32> to vector<8x8xf32>
    %133 = arith.subf %129, %132 : vector<8x8xf32>
    %134 = math.exp %133 : vector<8x8xf32>
    %cst_69 = arith.constant dense<0.000000e+00> : vector<8xf32>
    %135 = vector.multi_reduction <add>, %134, %cst_69 [1] : vector<8x8xf32> to vector<8xf32>
    %136 = vector.shape_cast %135 : vector<8xf32> to vector<8x1xf32>
    %137 = arith.truncf %134 : vector<8x8xf32> to vector<8x8xbf16>
    %cst_70 = arith.constant dense<0.000000e+00> : vector<8x4xf32>
    %138 = tpu.matmul %137, %128, %cst_70 {dimension_numbers = #tpu.dot_dimension_numbers<[1], [0], [0], [1], [0, 0, 1, 1], [], []>} : vector<8x8xbf16>, vector<8x4xbf16>, vector<8x4xf32> -> vector<8x4xf32>
    %139 = tpu.reciprocal %136 {approx = true} : vector<8x1xf32> -> vector<8x1xf32>
    %140 = vector.broadcast %139 : vector<8x1xf32> to vector<8x4xf32>
    %141 = arith.mulf %138, %140 : vector<8x4xf32>
    %c0_71 = arith.constant 0 : index
    %c28_72 = arith.constant 28 : index
    %142 = vector.load %arg12[%c0_71, %c28_72] : memref<8x32xf32, #tpu.memory_space<vmem>>, vector<8x4xf32>
    tpu.vector_store %arg12[%c0_71, %c28_72], %141 {strides = array<i32>} : memref<8x32xf32, #tpu.memory_space<vmem>>, vector<8x4xf32>,
    %c0_73 = arith.constant 0 : index
    %c0_74 = arith.constant 0 : index
    %143 = vector.load %arg12[%c0_73, %c0_74] : memref<8x32xf32, #tpu.memory_space<vmem>>, vector<8x32xf32>
    %144 = arith.truncf %143 : vector<8x32xf32> to vector<8x32xbf16>
    %c0_75 = arith.constant 0 : index
    %c0_76 = arith.constant 0 : index
    %145 = vector.load %arg6[%c0_75, %c0_76] : memref<32x32xbf16, #tpu.memory_space<vmem>>, vector<32x32xbf16>
    %cst_77 = arith.constant dense<0.000000e+00> : vector<8x32xf32>
    %146 = tpu.matmul %144, %145, %cst_77 {dimension_numbers = #tpu.dot_dimension_numbers<[1], [0], [0], [1], [0, 0, 1, 1], [], []>} : vector<8x32xbf16>, vector<32x32xbf16>, vector<8x32xf32> -> vector<8x32xf32>
    %c0_78 = arith.constant 0 : index
    %c0_79 = arith.constant 0 : index
    %147 = vector.load %arg7[%c0_78, %c0_79] : memref<1x32xf32, #tpu.memory_space<vmem>>, vector<1x32xf32>
    %148 = vector.broadcast %147 : vector<1x32xf32> to vector<8x32xf32>
    %149 = arith.addf %146, %148 : vector<8x32xf32>
    %c0_80 = arith.constant 0 : index
    %c0_81 = arith.constant 0 : index
    %c0_82 = arith.constant 0 : index
    %150 = vector.load %arg8[%c0_80, %c0_81, %c0_82] : memref<1x8x32xf32, #tpu.memory_space<vmem>>, vector<1x8x32xf32>
    %151 = vector.shape_cast %150 : vector<1x8x32xf32> to vector<8x32xf32>
    %152 = vector.shape_cast %149 : vector<8x32xf32> to vector<1x8x32xf32>
    tpu.vector_store %arg8[%c0_80, %c0_81, %c0_82], %152 {strides = array<i32>} : memref<1x8x32xf32, #tpu.memory_space<vmem>>, vector<1x8x32xf32>,
    return
  }
  func.func @transform_0(%arg0: i32, %arg1: i32) -> (i32, i32, i32) {
    %c0_i32 = arith.constant 0 : i32
    %c0_i32_0 = arith.constant 0 : i32
    %c0_i32_1 = arith.constant 0 : i32
    return %arg0, %c0_i32, %c0_i32_0 : i32, i32, i32
  }
  func.func @transform_1(%arg0: i32, %arg1: i32) -> (i32, i32) {
    %c0_i32 = arith.constant 0 : i32
    %c0_i32_0 = arith.constant 0 : i32
    %c0_i32_1 = arith.constant 0 : i32
    return %c0_i32, %c0_i32_0 : i32, i32
  }
  func.func @transform_2(%arg0: i32, %arg1: i32) -> (i32, i32) {
    %c0_i32 = arith.constant 0 : i32
    %c0_i32_0 = arith.constant 0 : i32
    %c0_i32_1 = arith.constant 0 : i32
    return %c0_i32, %c0_i32_0 : i32, i32
  }
  func.func @transform_3(%arg0: i32, %arg1: i32) -> (i32, i32) {
    %c0_i32 = arith.constant 0 : i32
    %c0_i32_0 = arith.constant 0 : i32
    %c0_i32_1 = arith.constant 0 : i32
    return %c0_i32, %c0_i32_0 : i32, i32
  }
  func.func @transform_4(%arg0: i32, %arg1: i32) -> (i32, i32) {
    %c0_i32 = arith.constant 0 : i32
    %c0_i32_0 = arith.constant 0 : i32
    %c0_i32_1 = arith.constant 0 : i32
    return %c0_i32, %c0_i32_0 : i32, i32
  }
  func.func @transform_5(%arg0: i32, %arg1: i32) -> (i32, i32) {
    %c0_i32 = arith.constant 0 : i32
    %c0_i32_0 = arith.constant 0 : i32
    %c0_i32_1 = arith.constant 0 : i32
    return %c0_i32, %c0_i32_0 : i32, i32
  }
  func.func @transform_6(%arg0: i32, %arg1: i32) -> (i32, i32, i32) {
    %c0_i32 = arith.constant 0 : i32
    %c0_i32_0 = arith.constant 0 : i32
    return %arg0, %arg1, %c0_i32 : i32, i32, i32
  }
}

</mosaic_0001>

<bundles_post_ra>
// kernel: tpu_custom_call.1
= control target key start
LH: loop header
LB: loop body
LE: loop exit
PB: predicated region body
PF: predicated region fallthrough
CT: control target
= control target key end

     0   :  { %s2911_s0 = inlined_call_operand.hbm [shape: f32[2,8,32], index: 0, kind: input, shape index: {}]   ;;  %s2912_s1 = inlined_call_operand.hbm [shape: bf16[32,32], index: 1, kind: input, shape index: {}]   ;;  %s2913_s2 = inlined_call_operand.hbm [shape: bf16[32,32], index: 2, kind: input, shape index: {}]   ;;  %s2914_s3 = inlined_call_operand.hbm [shape: bf16[32,32], index: 3, kind: input, shape index: {}]   ;;  %s2915_s4 = inlined_call_operand.hbm [shape: bf16[32,32], index: 4, kind: input, shape index: {}]   ;;  %s2916_s5 = inlined_call_operand.vmem [shape: f32[1,32], index: 5, kind: input, shape index: {}]   ;;  %s2917_s6 = inlined_call_operand.hbm [shape: f32[2,8,32], index: 6, kind: output, shape index: {}]  }
   0x1   :  { %2923 = sst [smem:[#allocation20_spill]] %s2912_s1 }
   0x2   :  { %11 = vsyncpa [#allocation7], 0 }
   0x3   :  { %13 = vsyncpa [#allocation7 + $0x1], 0 }
   0x4   :  { %14 = vsyncpa [#allocation10], 0 }
   0x5   :  { %15 = vsyncpa [#allocation13], 0 }
   0x6   :  { %16 = vsyncpa [#allocation8], 0 }
   0x7   :  { %18 = vsyncpa [#allocation8 + $0x1], 0  ;;  %s2422_s21 = smov 0   ;;  %s2424_s22 = smov 0  }
   0x8   :  { %s2426_s23 = smov 0   ;;  %s2428_s24 = smov 0  }
   0x9   :  { %s2430_s25 = smov 0   ;;  %s2432_s26 = smov 0  }
   0xa LB: > { %s2918_s27 = sadd.s32 4294967295, %s2361_s26   ;;  %p1718_p0 = scmp.ge.s32.totalorder %s2361_s26, 1  ;;  %s2361_s26 = sphi %s2432_s26, %s24_s26   ;;  %s2357_s25 = sphi %s2430_s25, %s2945_s25   ;;  %s2353_s24 = sphi %s2428_s24, %s2944_s24   ;;  %s2349_s23 = sphi %s2426_s23, %s2943_s23   ;;  %s2345_s22 = sphi %s2424_s22, %s2942_s22   ;;  %s2341_s21 = sphi %s2422_s21, %s2941_s21  }
   0xb   : > { %p2456_p1 = scmp.eq.s32.totalorder %s2918_s27, 0  ;;  %p200_p2 = scmp.lt.s32.totalorder %s2361_s26, 3 }
   0xc   : > { %s2363_s30 = smov [#allocation9]   ;;  %s2364_s9 = smov [#allocation12]  }
   0xd   : > { %s2924_s28 = scalar_select %p2456_p1, 1, 0 }
   0xe   : > { %p2461_p3 = pnand %p1718_p0, %p200_p2  ;;  %s212_s7 = sshll.u32 %s2363_s30, 4  ;;  %s2465_s7 = int_to_ptr.vmem [resolvable:$true] %s212_s7 }
   0xf   : > { %s238_s10 = sshll.u32 %s2364_s9, 4  ;;  %s2365_s11 = smov [#allocation11]   ;;  %s2476_s10 = int_to_ptr.vmem [resolvable:$true] %s238_s10 }
  0x10   : > { %s2925_s29 = scalar_select %p2461_p3, 1, 0 }
  0x11   : > { %p1973_p4 = pneg %p2461_p3  ;;  %s2478_s12 = sshll.u32 %s2365_s11, 4  ;;  %s226_s12 = int_to_ptr.vmem [resolvable:$true] %s2478_s12 }
  0x12   : > { %s2927_s1 = sld [smem:[#allocation20_spill]] }
  0x13   : > { %p2472_p6 = pnand %p1973_p4, %p2456_p1 }
  0x15   : > { %p2488_p8 = pneg %p2472_p6 }
  0x18   : > { %s2129_s15 = scalar_lea.hbm %s2927_s1, 256 }
  0x19   : > { %p2130_p7 = scmp.ne.s32.totalorder %s2927_s1, %s2129_s15  ;;  %p2136_p11 = scmp.lt.u32.totalorder %s2129_s15, %s2927_s1 }
  0x1b   : > { %p2132_p9 = pnand %p2488_p8, %p2130_p7 }
  0x1d   : > { %p2133_p10 = pneg %p2132_p9 }
  0x1f   : > { %p2138_p12 = pnand %p2136_p11, %p2133_p10 }
  0x21   : > { %2141 = shalt.err (!%p2138_p12)
}
  0x22   : > { %s2142_s30 = scalar_lea.vmem %s2465_s7, 256  ;;  %p2150_p4 = scmp.lt.s32.totalorder %s2465_s7, %s2465_s7 }
  0x23   : > { %p2143_p13 = scmp.ne.s32.totalorder %s2465_s7, %s2142_s30  ;;  %p2151_p5 = scmp.lt.s32.totalorder %s2142_s30, %s2142_s30 }
  0x25   : > { %p2145_p0 = pnand %p2143_p13, %p2488_p8  ;;  %p2152_p7 = por %p2151_p5, %p2150_p4 }
  0x27   : > { %p2146_p2 = pneg %p2145_p0 }
  0x29   : > { %p2153_p9 = pnand %p2152_p7, %p2146_p2 }
  0x2b   : > { %2156 = shalt.err (!%p2153_p9)
}
  0x2c   : > { %s2366_s9 = smov 64   ;;  %s2367_s11 = smov 4  }
  0x2d   : > { %1976 = dma.hbm_to_vmem [thread:$0]  (!%p2472_p6), %s2927_s1, 256, %s2465_s7, [#allocation10], %s2366_s9, %s2366_s9, %s2367_s11  }
  0x2e   : > { %s2157_s17 = scalar_lea.hbm %s2914_s3, 256 }
  0x2f   : > { %p2158_p5 = scmp.ne.s32.totalorder %s2914_s3, %s2157_s17  ;;  %p2164_p12 = scmp.lt.u32.totalorder %s2157_s17, %s2914_s3 }
  0x31   : > { %p2160_p10 = pnand %p2158_p5, %p2488_p8 }
  0x33   : > { %p2161_p11 = pneg %p2160_p10 }
  0x35   : > { %p2166_p13 = pnand %p2164_p12, %p2161_p11 }
  0x37   : > { %2169 = shalt.err (!%p2166_p13)
}
  0x38   : > { %s2170_s7 = scalar_lea.vmem %s2476_s10, 256  ;;  %p2178_p7 = scmp.lt.s32.totalorder %s2476_s10, %s2476_s10 }
  0x39   : > { %p2171_p0 = scmp.ne.s32.totalorder %s2476_s10, %s2170_s7  ;;  %p2179_p9 = scmp.lt.s32.totalorder %s2170_s7, %s2170_s7 }
  0x3b   : > { %p2173_p2 = pnand %p2171_p0, %p2488_p8  ;;  %p2180_p5 = por %p2179_p9, %p2178_p7 }
  0x3d   : > { %p2174_p4 = pneg %p2173_p2 }
  0x3f   : > { %p2181_p10 = pnand %p2180_p5, %p2174_p4 }
  0x41   : > { %2184 = shalt.err (!%p2181_p10)
}
  0x42   : > { %1982 = dma.hbm_to_vmem [thread:$0]  (!%p2472_p6), %s2914_s3, 256, %s2476_s10, [#allocation13], %s2366_s9, %s2366_s9, %s2367_s11  }
  0x43   : > { %s2185_s16 = scalar_lea.hbm %s2913_s2, 256 }
  0x44   : > { %p2186_p11 = scmp.ne.s32.totalorder %s2913_s2, %s2185_s16  ;;  %p2192_p0 = scmp.lt.u32.totalorder %s2185_s16, %s2913_s2 }
  0x46   : > { %p2188_p12 = pnand %p2186_p11, %p2488_p8 }
  0x48   : > { %p2189_p13 = pneg %p2188_p12 }
  0x4a   : > { %p2194_p2 = pnand %p2192_p0, %p2189_p13 }
  0x4c   : > { %2197 = shalt.err (!%p2194_p2)
}
  0x4d   : > { %s2198_s7 = scalar_lea.vmem %s226_s12, 256  ;;  %p2206_p5 = scmp.lt.s32.totalorder %s226_s12, %s226_s12 }
  0x4e   : > { %p2199_p4 = scmp.ne.s32.totalorder %s226_s12, %s2198_s7  ;;  %p2207_p10 = scmp.lt.s32.totalorder %s2198_s7, %s2198_s7 }
  0x50   : > { %p2201_p7 = pnand %p2199_p4, %p2488_p8  ;;  %p2208_p3 = por %p2207_p10, %p2206_p5 }
  0x52   : > { %p2202_p9 = pneg %p2201_p7 }
  0x54   : > { %p2209_p1 = pnand %p2208_p3, %p2202_p9 }
  0x56   : > { %2212 = shalt.err (!%p2209_p1)
}
  0x57   : > { %1979 = dma.hbm_to_vmem [thread:$0]  (!%p2472_p6), %s2913_s2, 256, %s226_s12, [#allocation10], %s2366_s9, %s2366_s9, %s2367_s11  }
  0x58   : > { %s2368_s13 = smov [#allocation14]   ;;  %s2213_s17 = scalar_lea.hbm %s2915_s4, 256 }
  0x59   : > { %s251_s14 = sshll.u32 %s2368_s13, 4  ;;  %p2214_p1 = scmp.ne.s32.totalorder %s2915_s4, %s2213_s17  ;;  %s252_s14 = int_to_ptr.vmem [resolvable:$true] %s251_s14 }
  0x5a   : > { %p2220_p12 = scmp.lt.u32.totalorder %s2213_s17, %s2915_s4 }
  0x5b   : > { %p2216_p3 = pnand %p2214_p1, %p2488_p8 }
  0x5d   : > { %p2217_p11 = pneg %p2216_p3 }
  0x5f   : > { %p2222_p13 = pnand %p2220_p12, %p2217_p11 }
  0x61   : > { %2225 = shalt.err (!%p2222_p13)
}
  0x62   : > { %s2226_s12 = scalar_lea.vmem %s252_s14, 256  ;;  %p2234_p7 = scmp.lt.s32.totalorder %s252_s14, %s252_s14 }
  0x63   : > { %p2227_p0 = scmp.ne.s32.totalorder %s252_s14, %s2226_s12  ;;  %p2235_p9 = scmp.lt.s32.totalorder %s2226_s12, %s2226_s12 }
  0x65   : > { %p2229_p2 = pnand %p2227_p0, %p2488_p8  ;;  %p2236_p5 = por %p2235_p9, %p2234_p7 }
  0x67   : > { %p2230_p4 = pneg %p2229_p2 }
  0x69   : > { %p2237_p10 = pnand %p2236_p5, %p2230_p4 }
  0x6b   : > { %2240 = shalt.err (!%p2237_p10)
}
  0x6c   : > { %1985 = dma.hbm_to_vmem [thread:$0]  (!%p2472_p6), %s2915_s4, 256, %s252_s14, [#allocation13], %s2366_s9, %s2366_s9, %s2367_s11  }
  0x6d   : > { %s1717_s8 = sadd.s32 4294967294, %s2361_s26   ;;  %s36_s18 = sadd.s32 1, %s2357_s25 }
  0x6e   : > { %p38_p8 = scmp.ge.s32.totalorder %s36_s18, 2  ;;  %s43_s13 = sadd.s32 1, %s2349_s23 }
  0x6f   : > { %p50_p1 = scmp.ne.s32.totalorder %s2349_s23, %s2345_s22  ;;  %p51_p3 = scmp.eq.s32.totalorder %s2361_s26, 0 }
  0x70   : > { %s2947_s18 = smov (%p38_p8, %s36_s18), 0  ;;  %p56_p12 = scmp.ne.s32.totalorder %s2345_s22, %s2341_s21 }
  0x71   : > { %p2589_p11 = por %p51_p3, %p50_p1  ;;  %s40_s9 = ssub.s32 %s2357_s25, %s2947_s18 }
  0x72   : > { %s2930_s11 = sadd.s32 4294967295, %s2361_s26   ;;  %p41_p13 = scmp.eq.s32.totalorder %s40_s9, 0 }
  0x73   : > { %p187_p6 = scmp.eq.s32.totalorder %s2930_s11, 1  ;;  %p2931_p0 = scmp.ne.s32.totalorder %s2924_s28, 0 }
  0x74   : > { %p193_p7 = scmp.eq.s32.totalorder %s1717_s8, 1  ;;  %p1998_p5 = scmp.lt.s32.totalorder %s2361_s26, 2 }
  0x75   : > { %p2601_p2 = por %p2931_p0, %p56_p12  ;;  %p2605_p4 = por %p187_p6, %p50_p1 }
  0x76   : > { %s2610_s17 = scalar_select %p41_p13, %s2349_s23, %s43_s13  }
  0x77   : > { %s2933_s16 = scalar_select %p2605_p4, 1, 0 }
  0x78   : > { %p2612_p9 = por %p193_p7, %p56_p12  ;;  %s268_s20 = sand.u32 1, %s2349_s23  }
  0x79   : > { %s1725_s30 = sshll.u32 %s2357_s25, 7  ;;  %s1724_s7 = sshll.u32 %s268_s20, 3 }
  0x7a   : > { %s2934_s19 = scalar_select %p2612_p9, 1, 0 }
  0x7b   : > { %s2622_s27 = scalar_lea.hbm %s2911_s0, %s1725_s30  ;;  %s272_s8 = scalar_lea.vmem [#allocation6], %s1724_s7 }
  0x7c   : > { %s279_s13 = sshll.u32 %s272_s8, 4  ;;  %p2626_p10 = pnand %p1998_p5, %p2589_p11  ;;  %s2630_s13 = int_to_ptr.vmem [resolvable:$true] %s279_s13 }
  0x7d   : > { %s269_s11 = scalar_lea.sflag [#allocation7], %s268_s20  ;;  %s2241_s1 = scalar_lea.hbm %s2622_s27, 128 }
  0x7e   : > { %p2242_p8 = scmp.ne.s32.totalorder %s2622_s27, %s2241_s1  ;;  %p2243_p1 = pneg %p2626_p10 }
  0x7f   : > { %s2246_s15 = scalar_lea.hbm %s2911_s0, 256  ;;  %p2247_p11 = scmp.lt.u32.totalorder %s2622_s27, %s2911_s0 }
  0x80   : > { %p2244_p3 = pnand %p2243_p1, %p2242_p8  ;;  %p2248_p6 = scmp.lt.u32.totalorder %s2246_s15, %s2241_s1 }
  0x81   : > { %p2250_p0 = scmp.lt.u32.totalorder %s2241_s1, %s2622_s27 }
  0x82   : > { %p2245_p12 = pneg %p2244_p3  ;;  %p2249_p13 = por %p2248_p6, %p2247_p11 }
  0x84   : > { %p2251_p7 = por %p2250_p0, %p2249_p13 }
  0x86   : > { %p2252_p5 = pnand %p2251_p7, %p2245_p12 }
  0x88   : > { %2255 = shalt.err (!%p2252_p5)
}
  0x89   : > { %s2256_s20 = scalar_lea.vmem %s2630_s13, 128  ;;  %s2369_s8 = smov [#allocation6]  }
  0x8a   : > { %p2257_p8 = scmp.ne.s32.totalorder %s2630_s13, %s2256_s20  ;;  %s2261_s30 = sshll.u32 %s2369_s8, 4  ;;  %s2262_s30 = int_to_ptr.vmem [resolvable:$false] %s2261_s30 }
  0x8b   : > { %s2263_s7 = scalar_lea.vmem %s2262_s30, 256  ;;  %p2264_p4 = scmp.lt.s32.totalorder %s2630_s13, %s2262_s30 }
  0x8c   : > { %p2259_p3 = pnand %p2257_p8, %p2243_p1  ;;  %p2265_p11 = scmp.lt.s32.totalorder %s2263_s7, %s2256_s20 }
  0x8e   : > { %p2260_p9 = pneg %p2259_p3  ;;  %p2266_p6 = por %p2265_p11, %p2264_p4 }
  0x90   : > { %p2267_p13 = pnand %p2266_p6, %p2260_p9 }
  0x92   : > { %2270 = shalt.err (!%p2267_p13)
}
  0x93   : > { %1989 = dma.hbm_to_vmem [thread:$0]  (!%p2626_p10), %s2622_s27, 128, %s2630_s13, %s269_s11  }
  0x94   : > { %p2936_p12 = scmp.ne.s32.totalorder %s2925_s29, 0 }
  0x95   : > { %s2660_s1 = sand.u32 (!%p2936_p12), 1, %s2345_s22  }
  0x96   : > { %288 = sbr.rel (%p2936_p12) target bundleno = 1536 (0x600), region = 44  ;;  %s1727_s15 = sshll.u32 (!%p2936_p12), %s2660_s1, 3 }
  0x97   : > { %s291_s12 = scalar_lea.sflag (!%p2936_p12), [#allocation7], %s2660_s1  ;;  %s294_s10 = scalar_lea.vmem (!%p2936_p12), [#allocation6], %s1727_s15 }
  0x9d   : > { %2324 = dma.done.wait (%p2601_p2), %s291_s12, 128  }
  0x9e   : > { %2326 = vsyncadd (%p2601_p2), %s291_s12, 4294967168  ;;  %p2937_p4 = scmp.ne.s32.totalorder %s2924_s28, 0 }
  0xa0   : > { %2328 = dma.done.wait (%p2937_p4), [#allocation10], 512  }
  0xa1   : > { %2330 = vsyncadd (%p2937_p4), [#allocation10], 4294966784 }
  0xa2   : > { %2332 = dma.done.wait (%p2937_p4), [#allocation13], 512  }
  0xa3   : > { %2334 = vsyncadd (%p2937_p4), [#allocation13], 4294966784  ;;  %v2370_v0 = vmov 0.0   ;;  %vm2371_vm0 = vmmov 0   ;;  %v2074_v1 = vld [vmem:[#allocation11] sm:$0xff]   ;;  %v2075_v2 = vld [vmem:[#allocation9] sm:$0xff]  }
  0xa4   : > { %1833 = vmatprep.subr.bf16.mxu1 %v2370_v0  ;;  %1825 = vmatprep.subr.bf16.mxu0 %v2370_v0  ;;  %v2076_v3 = vld [vmem:[#allocation11 + $0x8] sm:$0xff]   ;;  %v2077_v5 = vld [vmem:[#allocation9 + $0x8] sm:$0xff]   ;;  %vm362_vm1 = vcmask 261120   ;;  %v2078_v7 = vld [vmem:[#allocation12] sm:$0xff]   ;;  %vm407_vm2 = vcmask 257024   ;;  %vm533_vm3 = vcmask 31744  }
  0xa5   : > { %1837 = vmatprep.mubr.msk.bf16.mxu1 %vm2371_vm0, %v2370_v0  ;;  %1829 = vmatprep.mubr.msk.bf16.mxu0 %vm2371_vm0, %v2370_v0  ;;  %v344_v4 = vld [vmem:[%s294_s10] sm:$0xff]  ;;  %v2079_v8 = vld [vmem:[#allocation12 + $0x8] sm:$0xff]   ;;  %s2372_s28 = smov 120   ;;  %s2373_s29 = smov 124   ;;  %vm594_vm4 = vcmask 1043456   ;;  %vm580_vm5 = vcmask 64512  }
  0xa6   : > { %1834 = vmatpush3.bf16.msra.mxu1 %v2074_v1  ;;  %1826 = vmatpush3.bf16.msra.mxu0 %v2075_v2  ;;  %v345_v6 = vpack.c.bf16 %v344_v4, %v344_v4  ;;  %s2374_s14 = smov 116   ;;  %s2375_s27 = smov 112   ;;  %vm766_vm6 = vcmask 64544   ;;  %vm890_vm7 = vcmask 97344   ;;  %vm1014_vm8 = vcmask 130144  }
  0xa7   : > { %1835 = vmatprep.subr.bf16.mxu1 %v2370_v0  ;;  %1827 = vmatprep.subr.bf16.mxu0 %v2370_v0  ;;  %s2376_s13 = smov 108   ;;  %s2377_s9 = smov 104   ;;  %vm1138_vm9 = vcmask 162944   ;;  %vm1262_vm10 = vcmask 195744   ;;  %vm1386_vm11 = vcmask 228544   ;;  %vm1510_vm12 = vcmask 261344  }
  0xa8   : > { %s2378_s11 = smov 100   ;;  %s2379_s20 = smov 4  }
  0xa9   : > { %s2380_s8 = smov 8   ;;  %s2381_s30 = smov 12  }
  0xaa   : > { %1836 = vmatpush3.bf16.msra.mxu1 %v2076_v3  ;;  %1828 = vmatpush3.bf16.msra.mxu0 %v2077_v5  ;;  %s2382_s7 = smov 16   ;;  %s2383_s12 = smov 20  }
  0xab   : > { %1849 = vmatprep.subr.bf16.mxu1 %v2370_v0  ;;  %1841 = vmatprep.subr.bf16.mxu0 %v2370_v0  ;;  %s2384_s10 = smov 24   ;;  %p2938_p9 = scmp.ne.s32.totalorder %s2933_s16, 0 }
  0xad   : > { %1838 = vmatmul.mubr.msk.bf16.vlgmr.msra.gmra.mrb[0].mxu1 %vm362_vm1, %v345_v6  ;;  %1830 = vmatmul.mubr.msk.bf16.vlgmr.msra.gmra.mrb[0].mxu0 %vm362_vm1, %v345_v6 }
  0xae   : > { %1851 = vmatprep.mubr.msk.bf16.mxu1 %vm2371_vm0, %v2370_v0  ;;  %1842 = vmatpush3.bf16.msra.mxu0 %v2078_v7 }
  0xaf   : > { %1845 = vmatprep.mubr.msk.bf16.mxu0 %vm2371_vm0, %v2370_v0  ;;  %1843 = vmatprep.subr.bf16.mxu0 %v2370_v0 }
  0xb2   : > { %1844 = vmatpush3.bf16.msra.mxu0 %v2079_v8 }
  0xb3   : > { %1855 = vmatprep.subr.bf16.mxu0 %v2370_v0 }
  0xb5   : > { %1846 = vmatmul.mubr.msk.bf16.vlgmr.msra.gmra.mrb[4].mxu0 %vm362_vm1, %v345_v6 }
  0xb6   : > { %1857 = vmatprep.mubr.msk.bf16.mxu0 %vm2371_vm0, %v2370_v0 }
 0x180   : > { %v459_v9 = vpop.f32.mrb[0].mxu1  ;;  %v400_v12 = vpop.f32.mrb[0].mxu0 }
 0x181   : > { %v465_v10 = vpack.c.bf16 %v459_v9, %v459_v9  ;;  %v1839_v11 = vpop.f32.mrb[1].mxu1  ;;  %v406_v14 = vpack.c.bf16 %v400_v12, %v400_v12  ;;  %v1831_v15 = vpop.f32.mrb[1].mxu0 }
 0x182   : > { %v462_v13 = vpop.f32.mrb[2].mxu1  ;;  %v403_v17 = vpop.f32.mrb[2].mxu0 }
 0x183   : > { %466 = vst.msk [vmem:[#allocation3] sm:$0xf] %vm407_vm2, %v465_v10  ;;  %v1840_v16 = vpop.f32.mrb[3].mxu1  ;;  %408 = vst.msk [vmem:[#allocation2] sm:$0xf] %vm407_vm2, %v406_v14  ;;  %v1832_v18 = vpop.f32.mrb[3].mxu0 }
 0x188   : > { %v517_v30 = vpop.f32.mrb[4].mxu0 }
 0x189   : > { %v523_v31 = vpack.c.bf16 %v517_v30, %v517_v30  ;;  %v1847_v32 = vpop.f32.mrb[5].mxu0 }
 0x18a   : > { %v531_v19 = vld [vmem:[#allocation3] sm:$0xf]  ;;  %v530_v23 = vld [vmem:[#allocation2] sm:$0xf]  ;;  %v520_v33 = vpop.f32.mrb[6].mxu0 }
 0x18b   : > { %v2080_v20 = vld [vmem:[#allocation3] ss:$0 sps:$4 sm:$0xff]   ;;  %v538_v21 = vsel %vm533_vm3, %v531_v19, 0  ;;  %v1744_v24 = vcombine.low %v530_v23, %v530_v23  ;;  %524 = vst.msk [vmem:[#allocation4] sm:$0xf] %vm407_vm2, %v523_v31  ;;  %v1848_v34 = vpop.f32.mrb[7].mxu0 }
 0x18c   : > { %v2081_v22 = vld [vmem:[#allocation3] ss:$0 sps:$4 sm:$0xff]   ;;  %1850 = vmatpush3.bf16.xpose.msra.mxu1 %v538_v21  ;;  %775 = vrot.lane.b32.xlu1 %v2080_v20, %s2372_s28 }
 0x18d   : > { %651 = vrot.lane.b32.xlu0 %v2081_v22, %s2373_s29  ;;  %1861 = vmatprep.subr.bf16.mxu1 %v2370_v0  ;;  %v2083_v25 = vld [vmem:[#allocation3] ss:$0 sps:$4 sm:$0xff]  }
 0x18e   : > { %v2084_v26 = vld [vmem:[#allocation3] ss:$0 sps:$4 sm:$0xff]  }
 0x18f   : > { %v2085_v27 = vld [vmem:[#allocation3] ss:$0 sps:$4 sm:$0xff]  }
 0x190   : > { %770 = vrot.lane.b32.xlu1 %v1744_v24, %s2372_s28  ;;  %v2086_v28 = vld [vmem:[#allocation3] ss:$0 sps:$4 sm:$0xff]  }
 0x191   : > { %646 = vrot.lane.b32.xlu0 %v1744_v24, %s2373_s29  ;;  %v2087_v29 = vld [vmem:[#allocation3] ss:$0 sps:$4 sm:$0xff]  }
 0x192   : > { %v2088_v35 = vld [vmem:[#allocation4] ss:$0 sps:$4 sm:$0xff]  }
 0x193   : > { %1852 = vmatmul.mubr.msk.bf16.vlgmr.msra.gmra.mrb[4].mxu1 %vm533_vm3, %v530_v23  ;;  %v2089_v36 = vld [vmem:[#allocation4] ss:$0 sps:$4 sm:$0xff]  }
 0x194   : > { %894 = vrot.lane.b32.xlu1 %v1744_v24, %s2374_s14  ;;  %1863 = vmatprep.mubr.msk.bf16.mxu1 %vm2371_vm0, %v2370_v0  ;;  %v532_v37 = vld [vmem:[#allocation4] sm:$0xf] }
 0x195   : > { %899 = vrot.lane.b32.xlu0 %v2083_v25, %s2374_s14  ;;  %v596_v38 = vsel %vm594_vm4, %v532_v37, 0  ;;  %v2090_v15 = vld [vmem:[#allocation4] ss:$0 sps:$4 sm:$0xff]  }
 0x196   : > { %1856 = vmatpush3.bf16.msra.mxu0 %v596_v38  ;;  %v2091_v30 = vld [vmem:[#allocation4] ss:$0 sps:$4 sm:$0xff]  }
 0x197   : > { %1867 = vmatprep.subr.bf16.mxu0 %v2370_v0 }
 0x198   : > { %1018 = vrot.lane.b32.xlu1 %v1744_v24, %s2375_s27 }
 0x199   : > { %1023 = vrot.lane.b32.xlu0 %v2084_v26, %s2375_s27 }
 0x19c   : > { %1142 = vrot.lane.b32.xlu1 %v1744_v24, %s2376_s13 }
 0x19d   : > { %1147 = vrot.lane.b32.xlu0 %v2085_v27, %s2376_s13 }
 0x1a0   : > { %1266 = vrot.lane.b32.xlu1 %v1744_v24, %s2377_s9 }
 0x1a1   : > { %1271 = vrot.lane.b32.xlu0 %v2086_v28, %s2377_s9 }
 0x1a4   : > { %1390 = vrot.lane.b32.xlu1 %v1744_v24, %s2378_s11 }
 0x1a5   : > { %1395 = vrot.lane.b32.xlu0 %v2087_v29, %s2378_s11 }
 0x1a8   : > { %836 = vrot.lane.b32.xlu1 %v2089_v36, %s2372_s28  ;;  %s2385_s28 = smov 28  }
 0x1a9   : > { %712 = vrot.lane.b32.xlu0 %v2088_v35, %s2373_s29 }
 0x1fe   : > { %v776_v41 = vpop.permute.xlu1 %775 }
 0x1ff   : > { %v652_v39 = vpop.permute.xlu0 %651  ;;  %v781_v43 = vsel %vm533_vm3, %v776_v41, 0 }
 0x200   : > { %v657_v40 = vsel %vm533_vm3, %v652_v39, 0 }
 0x201   : > { %1862 = vmatpush3.bf16.xpose.msra.mxu1 %v657_v40 }
 0x202   : > { %1873 = vmatprep.subr.bf16.mxu1 %v2370_v0  ;;  %v771_v45 = vpop.permute.xlu1 %770 }
 0x203   : > { %v647_v42 = vpop.permute.xlu0 %646 }
 0x206   : > { %v895_v48 = vpop.permute.xlu1 %894 }
 0x207   : > { %v900_v44 = vpop.permute.xlu0 %899 }
 0x208   : > { %1864 = vmatmul.mubr.msk.bf16.vlgmr.msra.gmra.mrb[8].mxu1 %vm533_vm3, %v647_v42  ;;  %v905_v46 = vsel %vm533_vm3, %v900_v44, 0 }
 0x209   : > { %1874 = vmatpush3.bf16.xpose.msra.mxu1 %v781_v43  ;;  %1875 = vmatprep.mubr.msk.bf16.mxu1 %vm2371_vm0, %v2370_v0 }
 0x20a   : > { %1885 = vmatprep.subr.bf16.mxu1 %v2370_v0  ;;  %v1019_v51 = vpop.permute.xlu1 %1018 }
 0x20b   : > { %v1024_v47 = vpop.permute.xlu0 %1023 }
 0x20c   : > { %v1029_v49 = vsel %vm533_vm3, %v1024_v47, 0  ;;  %v2093_v47 = vld [vmem:[#allocation4] ss:$0 sps:$4 sm:$0xff]  }
 0x20e   : > { %v1143_v54 = vpop.permute.xlu1 %1142 }
 0x20f   : > { %v1148_v50 = vpop.permute.xlu0 %1147 }
 0x210   : > { %1876 = vmatmul.mubr.msk.bf16.vlgmr.msra.gmra.mrb[12].mxu1 %vm533_vm3, %v771_v45  ;;  %v1153_v52 = vsel %vm533_vm3, %v1148_v50, 0 }
 0x211   : > { %1886 = vmatpush3.bf16.xpose.msra.mxu1 %v905_v46  ;;  %1887 = vmatprep.mubr.msk.bf16.mxu1 %vm2371_vm0, %v2370_v0  ;;  %v2092_v46 = vld [vmem:[#allocation4] ss:$0 sps:$4 sm:$0xff]  }
 0x212   : > { %1897 = vmatprep.subr.bf16.mxu1 %v2370_v0  ;;  %v1267_v57 = vpop.permute.xlu1 %1266 }
 0x213   : > { %v1272_v53 = vpop.permute.xlu0 %1271 }
 0x214   : > { %v1277_v55 = vsel %vm533_vm3, %v1272_v53, 0 }
 0x216   : > { %v1391_v59 = vpop.permute.xlu1 %1390 }
 0x217   : > { %v1396_v56 = vpop.permute.xlu0 %1395 }
 0x218   : > { %1888 = vmatmul.mubr.msk.bf16.vlgmr.msra.gmra.mrb[16].mxu1 %vm533_vm3, %v895_v48  ;;  %v1401_v58 = vsel %vm533_vm3, %v1396_v56, 0  ;;  %v2094_v48 = vld [vmem:[#allocation4] ss:$0 sps:$4 sm:$0xff]  }
 0x219   : > { %1898 = vmatpush3.bf16.xpose.msra.mxu1 %v1029_v49  ;;  %1899 = vmatprep.mubr.msk.bf16.mxu1 %vm2371_vm0, %v2370_v0 }
 0x21a   : > { %1909 = vmatprep.subr.bf16.mxu1 %v2370_v0  ;;  %v837_v49 = vpop.permute.xlu1 %836 }
 0x21b   : > { %v713_v18 = vpop.permute.xlu0 %712 }
 0x21c   : > { %v718_v34 = vsel %vm594_vm4, %v713_v18, 0 }
 0x220   : > { %1900 = vmatmul.mubr.msk.bf16.vlgmr.msra.gmra.mrb[20].mxu1 %vm533_vm3, %v1019_v51 }
 0x221   : > { %1910 = vmatpush3.bf16.xpose.msra.mxu1 %v1153_v52  ;;  %1911 = vmatprep.mubr.msk.bf16.mxu1 %vm2371_vm0, %v2370_v0 }
 0x222   : > { %1921 = vmatprep.subr.bf16.mxu1 %v2370_v0 }
 0x228   : > { %1912 = vmatmul.mubr.msk.bf16.vlgmr.msra.gmra.mrb[24].mxu1 %vm533_vm3, %v1143_v54 }
 0x229   : > { %1922 = vmatpush3.bf16.xpose.msra.mxu1 %v1277_v55  ;;  %1923 = vmatprep.mubr.msk.bf16.mxu1 %vm2371_vm0, %v2370_v0 }
 0x22a   : > { %1933 = vmatprep.subr.bf16.mxu1 %v2370_v0 }
 0x230   : > { %1924 = vmatmul.mubr.msk.bf16.vlgmr.msra.gmra.mrb[28].mxu1 %vm533_vm3, %v1267_v57 }
 0x231   : > { %1934 = vmatpush3.bf16.xpose.msra.mxu1 %v1401_v58  ;;  %1935 = vmatprep.mubr.msk.bf16.mxu1 %vm2371_vm0, %v2370_v0 }
 0x232   : > { %1945 = vmatprep.subr.bf16.mxu1 %v2370_v0 }
 0x238   : > { %1936 = vmatmul.mubr.msk.bf16.vlgmr.msra.gmra.mrb[32].mxu1 %vm533_vm3, %v1391_v59 }
 0x239   : > { %1949 = vmatprep.mubr.msk.bf16.mxu1 %vm2371_vm0, %v2370_v0 }
 0x266   : > { %v574_v60 = vpop.f32.mrb[4].mxu1 }
 0x267   : > { %v1853_v61 = vpop.f32.mrb[5].mxu1  ;;  %v581_v62 = vsel %vm580_vm5, %v574_v60, -inf }
 0x268   : > { %v577_v63 = vpop.f32.mrb[6].mxu1  ;;  %582 = vmax.xlane.f32.xlu0 %v581_v62  ;;  %v842_v61 = vsel %vm594_vm4, %v837_v49, 0 }
 0x269   : > { %v1854_v1 = vpop.f32.mrb[7].mxu1 }
 0x2db   : > { %v2761_v2 = vpop.f32.mrb[8].mxu1 }
 0x2dc   : > { %v1865_v3 = vpop.f32.mrb[9].mxu1  ;;  %v699_v4 = vsel %vm580_vm5, %v2761_v2, -inf }
 0x2dd   : > { %v696_v5 = vpop.f32.mrb[10].mxu1  ;;  %700 = vmax.xlane.f32.xlu1 %v699_v4 }
 0x2de   : > { %v1866_v6 = vpop.f32.mrb[11].mxu1 }
 0x2e3   : > { %v2765_v7 = vpop.f32.mrb[12].mxu1 }
 0x2e4   : > { %v1877_v8 = vpop.f32.mrb[13].mxu1  ;;  %v823_v9 = vsel %vm580_vm5, %v2765_v7, -inf }
 0x2e5   : > { %v820_v10 = vpop.f32.mrb[14].mxu1  ;;  %824 = vmax.xlane.f32.xlu0 %v823_v9 }
 0x2e6   : > { %v1878_v11 = vpop.f32.mrb[15].mxu1 }
 0x2eb   : > { %v2769_v12 = vpop.f32.mrb[16].mxu1 }
 0x2ec   : > { %v1889_v13 = vpop.f32.mrb[17].mxu1  ;;  %v947_v14 = vsel %vm580_vm5, %v2769_v12, -inf }
 0x2ed   : > { %v944_v16 = vpop.f32.mrb[18].mxu1  ;;  %948 = vmax.xlane.f32.xlu0 %v947_v14 }
 0x2ee   : > { %v1890_v17 = vpop.f32.mrb[19].mxu1  ;;  %960 = vrot.lane.b32.xlu1 %v2090_v15, %s2374_s14 }
 0x2f3   : > { %v2774_v19 = vpop.f32.mrb[20].mxu1 }
 0x2f4   : > { %v1901_v20 = vpop.f32.mrb[21].mxu1  ;;  %v1071_v42 = vsel %vm580_vm5, %v2774_v19, -inf }
 0x2f5   : > { %v1068_v21 = vpop.f32.mrb[22].mxu1  ;;  %v583_v22 = vpop.xlane.xlu0 %582 }
 0x2f6   : > { %v584_v23 = vsub.f32 %v574_v60, %v583_v22  ;;  %v1902_v24 = vpop.f32.mrb[23].mxu1 }
 0x2f8   : > { %v585_v25 = vmul.f32 1.442695, %v584_v23 }
 0x2fa   : > { %2097 = vpow2.f32 %v585_v25 }
 0x2fb   : > { %v2776_v26 = vpop.f32.mrb[24].mxu1 }
 0x2fc   : > { %v1913_v27 = vpop.f32.mrb[25].mxu1  ;;  %v1195_v43 = vsel %vm580_vm5, %v2776_v26, -inf }
 0x2fd   : > { %v1192_v28 = vpop.f32.mrb[26].mxu1 }
 0x2fe   : > { %v1914_v29 = vpop.f32.mrb[27].mxu1 }
 0x303   : > { %v2778_v31 = vpop.f32.mrb[28].mxu1  ;;  %1084 = vrot.lane.b32.xlu0 %v2091_v30, %s2375_s27  ;;  %s1778_s27 = sshll.u32 %s2353_s24, 7  ;;  %s1583_s24 = scalar_lea.sflag [#allocation8], %s2660_s1 }
 0x304   : > { %v2781_v32 = vpop.eup %2097  ;;  %v1925_v33 = vpop.f32.mrb[29].mxu1  ;;  %v1319_v45 = vsel %vm580_vm5, %v2778_v31, -inf }
 0x305   : > { %v1316_v35 = vpop.f32.mrb[30].mxu1  ;;  %v590_v36 = vpack.c.bf16 %v2781_v32, %v2781_v32 }
 0x306   : > { %v1926_v37 = vpop.f32.mrb[31].mxu1 }
 0x307   : > { %1858 = vmatmul.mubr.msk.bf16.vlgmr.msra.gmra.mrb[8].mxu0 %vm580_vm5, %v590_v36 }
 0x308   : > { %1868 = vmatpush3.bf16.msra.mxu0 %v718_v34  ;;  %1869 = vmatprep.mubr.msk.bf16.mxu0 %vm2371_vm0, %v2370_v0 }
 0x309   : > { %1879 = vmatprep.subr.bf16.mxu0 %v2370_v0 }
 0x30b   : > { %v2790_v38 = vpop.f32.mrb[32].mxu1 }
 0x30c   : > { %v1937_v39 = vpop.f32.mrb[33].mxu1  ;;  %v1443_v44 = vsel %vm580_vm5, %v2790_v38, -inf }
 0x30d   : > { %v1440_v40 = vpop.f32.mrb[34].mxu1 }
 0x30e   : > { %v1938_v41 = vpop.f32.mrb[35].mxu1  ;;  %v587_v40 = vsel %vm580_vm5, %v2781_v32, 0.0 }
 0x312   : > { %1072 = vmax.xlane.f32.xlu1 %v1071_v42 }
 0x316   : > { %1196 = vmax.xlane.f32.xlu1 %v1195_v43 }
 0x31a   : > { %1444 = vmax.xlane.f32.xlu1 %v1443_v44 }
 0x322   : > { %1320 = vmax.xlane.f32.xlu0 %v1319_v45 }
 0x32b   : > { %1208 = vrot.lane.b32.xlu1 %v2092_v46, %s2376_s13  ;;  %s338_s13 = scalar_lea.vmem [#allocation15], %s1727_s15 }
 0x338   : > { %1332 = vrot.lane.b32.xlu0 %v2093_v47, %s2377_s9  ;;  %s1597_s9 = sshll.u32 %s338_s13, 4  ;;  %s2863_s9 = int_to_ptr.vmem [resolvable:$true] %s1597_s9 }
 0x339   : > { %s2271_s15 = scalar_lea.vmem %s2863_s9, 128 }
 0x33a   : > { %p2272_p2 = scmp.ne.s32.totalorder %s2863_s9, %s2271_s15 }
 0x33c   : > { %1456 = vrot.lane.b32.xlu0 %v2094_v48, %s2378_s11  ;;  %p2273_p10 = pnand %p2272_p2, %p2938_p9 }
 0x33e   : > { %p2274_p1 = pneg %p2273_p10 }
 0x36a   : > { %v701_v50 = vpop.xlane.xlu1 %700 }
 0x36b   : > { %v702_v51 = vsub.f32 %v2761_v2, %v701_v50 }
 0x36d   : > { %v703_v52 = vmul.f32 1.442695, %v702_v51 }
 0x36e   : > { %v961_v1 = vpop.permute.xlu1 %960 }
 0x36f   : > { %2099 = vpow2.f32 %v703_v52  ;;  %v966_v4 = vsel %vm594_vm4, %v961_v1, 0 }
 0x372   : > { %v825_v53 = vpop.xlane.xlu0 %824 }
 0x373   : > { %v826_v54 = vsub.f32 %v2765_v7, %v825_v53 }
 0x375   : > { %v827_v55 = vmul.f32 1.442695, %v826_v54 }
 0x377   : > { %2101 = vpow2.f32 %v827_v55 }
 0x379   : > { %v2100_v56 = vpop.eup %2099 }
 0x37a   : > { %v949_v57 = vpop.xlane.xlu0 %948  ;;  %v705_v58 = vsel %vm580_vm5, %v2100_v56, 0.0  ;;  %v708_v59 = vpack.c.bf16 %v2100_v56, %v2100_v56 }
 0x37b   : > { %v950_v60 = vsub.f32 %v2769_v12, %v949_v57  ;;  %706 = vadd.xlane.f32.xlu1 %v705_v58 }
 0x37c   : > { %1870 = vmatmul.mubr.msk.bf16.vlgmr.msra.gmra.mrb[12].mxu0 %vm580_vm5, %v708_v59 }
 0x37d   : > { %v951_v62 = vmul.f32 1.442695, %v950_v60  ;;  %1880 = vmatpush3.bf16.msra.mxu0 %v842_v61  ;;  %1881 = vmatprep.mubr.msk.bf16.mxu0 %vm2371_vm0, %v2370_v0 }
 0x37e   : > { %1891 = vmatprep.subr.bf16.mxu0 %v2370_v0  ;;  %v1085_v6 = vpop.permute.xlu0 %1084 }
 0x37f   : > { %2103 = vpow2.f32 %v951_v62  ;;  %v1090_v9 = vsel %vm594_vm4, %v1085_v6, 0 }
 0x381   : > { %v2102_v63 = vpop.eup %2101 }
 0x382   : > { %v829_v2 = vsel %vm580_vm5, %v2102_v63, 0.0  ;;  %v832_v3 = vpack.c.bf16 %v2102_v63, %v2102_v63 }
 0x383   : > { %830 = vadd.xlane.f32.xlu0 %v829_v2 }
 0x384   : > { %1882 = vmatmul.mubr.msk.bf16.vlgmr.msra.gmra.mrb[16].mxu0 %vm580_vm5, %v832_v3 }
 0x385   : > { %1892 = vmatpush3.bf16.msra.mxu0 %v966_v4  ;;  %1893 = vmatprep.mubr.msk.bf16.mxu0 %vm2371_vm0, %v2370_v0 }
 0x386   : > { %1903 = vmatprep.subr.bf16.mxu0 %v2370_v0 }
 0x389   : > { %v2104_v5 = vpop.eup %2103 }
 0x38a   : > { %v953_v7 = vsel %vm580_vm5, %v2104_v5, 0.0  ;;  %v956_v8 = vpack.c.bf16 %v2104_v5, %v2104_v5 }
 0x38b   : > { %954 = vadd.xlane.f32.xlu0 %v953_v7 }
 0x38c   : > { %1894 = vmatmul.mubr.msk.bf16.vlgmr.msra.gmra.mrb[20].mxu0 %vm580_vm5, %v956_v8 }
 0x38d   : > { %1904 = vmatpush3.bf16.msra.mxu0 %v1090_v9  ;;  %1905 = vmatprep.mubr.msk.bf16.mxu0 %vm2371_vm0, %v2370_v0 }
 0x38e   : > { %1915 = vmatprep.subr.bf16.mxu0 %v2370_v0 }
 0x39f   : > { %v1073_v10 = vpop.xlane.xlu1 %1072 }
 0x3a0   : > { %v1074_v11 = vsub.f32 %v2774_v19, %v1073_v10 }
 0x3a2   : > { %v1075_v12 = vmul.f32 1.442695, %v1074_v11 }
 0x3a3   : > { %v1197_v13 = vpop.xlane.xlu1 %1196 }
 0x3a4   : > { %2105 = vpow2.f32 %v1075_v12  ;;  %v1198_v14 = vsub.f32 %v2776_v26, %v1197_v13 }
 0x3a6   : > { %v1199_v15 = vmul.f32 1.442695, %v1198_v14 }
 0x3a7   : > { %v1445_v16 = vpop.xlane.xlu1 %1444 }
 0x3a8   : > { %2107 = vpow2.f32 %v1199_v15  ;;  %v1446_v17 = vsub.f32 %v2790_v38, %v1445_v16 }
 0x3aa   : > { %v1447_v18 = vmul.f32 1.442695, %v1446_v17 }
 0x3ab   : > { %v1209_v21 = vpop.permute.xlu1 %1208 }
 0x3ac   : > { %2109 = vpow2.f32 %v1447_v18  ;;  %v1214_v25 = vsel %vm594_vm4, %v1209_v21, 0 }
 0x3ae   : > { %v2106_v20 = vpop.eup %2105 }
 0x3af   : > { %v1321_v22 = vpop.xlane.xlu0 %1320  ;;  %v1077_v23 = vsel %vm580_vm5, %v2106_v20, 0.0  ;;  %v1080_v24 = vpack.c.bf16 %v2106_v20, %v2106_v20 }
 0x3b0   : > { %v1322_v19 = vsub.f32 %v2778_v31, %v1321_v22  ;;  %1078 = vadd.xlane.f32.xlu1 %v1077_v23  ;;  %v2095_v23 = vld [vmem:[#allocation14] sm:$0xff]  }
 0x3b1   : > { %1906 = vmatmul.mubr.msk.bf16.vlgmr.msra.gmra.mrb[24].mxu0 %vm580_vm5, %v1080_v24  ;;  %1946 = vmatpush3.bf16.msra.mxu1 %v2095_v23 }
 0x3b2   : > { %v2108_v26 = vpop.eup %2107  ;;  %v1323_v27 = vmul.f32 1.442695, %v1322_v19  ;;  %1916 = vmatpush3.bf16.msra.mxu0 %v1214_v25  ;;  %1917 = vmatprep.mubr.msk.bf16.mxu0 %vm2371_vm0, %v2370_v0  ;;  %v2096_v25 = vld [vmem:[#allocation14 + $0x8] sm:$0xff]  }
 0x3b3   : > { %v1201_v28 = vsel %vm580_vm5, %v2108_v26, 0.0  ;;  %1927 = vmatprep.subr.bf16.mxu0 %v2370_v0  ;;  %v1333_v30 = vpop.permute.xlu0 %1332  ;;  %v1204_v33 = vpack.c.bf16 %v2108_v26, %v2108_v26  ;;  %1947 = vmatprep.subr.bf16.mxu1 %v2370_v0 }
 0x3b4   : > { %2111 = vpow2.f32 %v1323_v27  ;;  %1202 = vadd.xlane.f32.xlu0 %v1201_v28  ;;  %v1338_v34 = vsel %vm594_vm4, %v1333_v30, 0 }
 0x3b5   : > { %1948 = vmatpush3.bf16.msra.mxu1 %v2096_v25 }
 0x3b6   : > { %v2110_v29 = vpop.eup %2109 }
 0x3b7   : > { %v1449_v31 = vsel %vm580_vm5, %v2110_v29, 0.0  ;;  %v1457_v36 = vpop.permute.xlu0 %1456  ;;  %v1452_v41 = vpack.c.bf16 %v2110_v29, %v2110_v29 }
 0x3b8   : > { %1450 = vadd.xlane.f32.xlu0 %v1449_v31  ;;  %v1462_v39 = vsel %vm594_vm4, %v1457_v36, 0 }
 0x3b9   : > { %1918 = vmatmul.mubr.msk.bf16.vlgmr.msra.gmra.mrb[28].mxu0 %vm580_vm5, %v1204_v33 }
 0x3ba   : > { %1928 = vmatpush3.bf16.msra.mxu0 %v1338_v34  ;;  %1929 = vmatprep.mubr.msk.bf16.mxu0 %vm2371_vm0, %v2370_v0 }
 0x3bb   : > { %1939 = vmatprep.subr.bf16.mxu0 %v2370_v0 }
 0x3be   : > { %v2112_v35 = vpop.eup %2111 }
 0x3bf   : > { %v1325_v37 = vsel %vm580_vm5, %v2112_v35, 0.0  ;;  %v1328_v38 = vpack.c.bf16 %v2112_v35, %v2112_v35 }
 0x3c0   : > { %1326 = vadd.xlane.f32.xlu1 %v1325_v37 }
 0x3c1   : > { %1930 = vmatmul.mubr.msk.bf16.vlgmr.msra.gmra.mrb[32].mxu0 %vm580_vm5, %v1328_v38 }
 0x3c2   : > { %1940 = vmatpush3.bf16.msra.mxu0 %v1462_v39  ;;  %1941 = vmatprep.mubr.msk.bf16.mxu0 %vm2371_vm0, %v2370_v0 }
 0x3c4   : > { %588 = vadd.xlane.f32.xlu1 %v587_v40 }
 0x3c9   : > { %1942 = vmatmul.mubr.msk.bf16.vlgmr.msra.gmra.mrb[36].mxu0 %vm580_vm5, %v1452_v41 }
 0x3da   : > { %v632_v42 = vpop.f32.mrb[8].mxu0 }
 0x3db   : > { %v1859_v43 = vpop.f32.mrb[9].mxu0 }
 0x3dc   : > { %v635_v44 = vpop.f32.mrb[10].mxu0 }
 0x3dd   : > { %v1860_v45 = vpop.f32.mrb[11].mxu0 }
 0x3de   : > { %v1773_v45 = vld [vmem:[%s2916_s5] ss:$0 sm:$0xff] }
 0x408   : > { %v707_v46 = vpop.xlane.xlu1 %706 }
 0x409   : > { %2113 = vrcp.f32 %v707_v46 }
 0x410   : > { %v831_v48 = vpop.xlane.xlu0 %830 }
 0x411   : > { %2115 = vrcp.f32 %v831_v48 }
 0x413   : > { %v2114_v50 = vpop.eup %2113 }
 0x418   : > { %v955_v55 = vpop.xlane.xlu0 %954 }
 0x41b   : > { %v2116_v57 = vpop.eup %2115 }
 0x43d   : > { %v1079_v47 = vpop.xlane.xlu1 %1078 }
 0x441   : > { %v1203_v8 = vpop.xlane.xlu0 %1202 }
 0x445   : > { %v1451_v21 = vpop.xlane.xlu0 %1450 }
 0x44d   : > { %v1327_v49 = vpop.xlane.xlu1 %1326 }
 0x44f   : > { %v754_v51 = vpop.f32.mrb[12].mxu0 }
 0x450   : > { %v761_v52 = vmul.f32 %v2114_v50, %v754_v51  ;;  %v1871_v53 = vpop.f32.mrb[13].mxu0 }
 0x451   : > { %v589_v54 = vpop.xlane.xlu1 %588  ;;  %v757_v32 = vpop.f32.mrb[14].mxu0 }
 0x452   : > { %2117 = vrcp.f32 %v589_v54  ;;  %763 = vrot.lane.b32.xlu0 %v761_v52, %s2379_s20  ;;  %v1872_v56 = vpop.f32.mrb[15].mxu0 }
 0x453   : > { %2119 = vrcp.f32 %v955_v55 }
 0x454   : > { %2121 = vrcp.f32 %v1079_v47 }
 0x455   : > { %2123 = vrcp.f32 %v1203_v8 }
 0x456   : > { %2125 = vrcp.f32 %v1327_v49 }
 0x457   : > { %v878_v58 = vpop.f32.mrb[16].mxu0  ;;  %2127 = vrcp.f32 %v1451_v21 }
 0x458   : > { %v885_v59 = vmul.f32 %v2116_v57, %v878_v58  ;;  %v1883_v60 = vpop.f32.mrb[17].mxu0 }
 0x459   : > { %v881_v61 = vpop.f32.mrb[18].mxu0 }
 0x45a   : > { %887 = vrot.lane.b32.xlu1 %v885_v59, %s2380_s8  ;;  %v1884_v62 = vpop.f32.mrb[19].mxu0  ;;  %s2861_s8 = scalar_lea.hbm %s2917_s6, %s1778_s27 }
 0x45c   : > { %v2118_v63 = vpop.eup %2117 }
 0x45d   : > { %v639_v1 = vmul.f32 %v2118_v63, %v632_v42  ;;  %v2120_v2 = vpop.eup %2119 }
 0x45e   : > { %v2122_v9 = vpop.eup %2121 }
 0x45f   : > { %640 = vst.msk [vmem:[#allocation5] sm:$0xff] %vm533_vm3, %v639_v1  ;;  %v1002_v3 = vpop.f32.mrb[20].mxu0  ;;  %v2124_v15 = vpop.eup %2123 }
 0x460   : > { %v1009_v4 = vmul.f32 %v2120_v2, %v1002_v3  ;;  %v1895_v5 = vpop.f32.mrb[21].mxu0  ;;  %v2126_v24 = vpop.eup %2125 }
 0x461   : > { %v1005_v6 = vpop.f32.mrb[22].mxu0  ;;  %v2128_v30 = vpop.eup %2127 }
 0x462   : > { %1011 = vrot.lane.b32.xlu1 %v1009_v4, %s2381_s30  ;;  %v1896_v7 = vpop.f32.mrb[23].mxu0  ;;  %s2386_s30 = smov [#allocation15]  }
 0x484   : > { %v1126_v10 = vpop.f32.mrb[24].mxu0 }
 0x485   : > { %v1133_v11 = vmul.f32 %v2122_v9, %v1126_v10  ;;  %v1907_v12 = vpop.f32.mrb[25].mxu0 }
 0x486   : > { %v1129_v13 = vpop.f32.mrb[26].mxu0 }
 0x487   : > { %1135 = vrot.lane.b32.xlu0 %v1133_v11, %s2382_s7  ;;  %v1908_v14 = vpop.f32.mrb[27].mxu0  ;;  %s2275_s7 = sshll.u32 %s2386_s30, 4  ;;  %s2276_s7 = int_to_ptr.vmem [resolvable:$false] %s2275_s7 }
 0x488   : > { %p2278_p0 = scmp.lt.s32.totalorder %s2863_s9, %s2276_s7 }
 0x48c   : > { %v1250_v16 = vpop.f32.mrb[28].mxu0 }
 0x48d   : > { %v1257_v17 = vmul.f32 %v2124_v15, %v1250_v16  ;;  %v1919_v18 = vpop.f32.mrb[29].mxu0 }
 0x48e   : > { %v1253_v20 = vpop.f32.mrb[30].mxu0 }
 0x48f   : > { %1259 = vrot.lane.b32.xlu1 %v1257_v17, %s2383_s12  ;;  %v1920_v22 = vpop.f32.mrb[31].mxu0  ;;  %s2277_s12 = scalar_lea.vmem %s2276_s7, 256 }
 0x490   : > { %p2279_p7 = scmp.lt.s32.totalorder %s2277_s12, %s2271_s15 }
 0x492   : > { %p2280_p5 = por %p2279_p7, %p2278_p0 }
 0x494   : > { %v1374_v19 = vpop.f32.mrb[32].mxu0  ;;  %p2281_p8 = pnand %p2280_p5, %p2274_p1 }
 0x495   : > { %v1381_v26 = vmul.f32 %v2126_v24, %v1374_v19  ;;  %v1931_v27 = vpop.f32.mrb[33].mxu0 }
 0x496   : > { %v1377_v28 = vpop.f32.mrb[34].mxu0 }
 0x497   : > { %1383 = vrot.lane.b32.xlu0 %v1381_v26, %s2384_s10  ;;  %v1932_v29 = vpop.f32.mrb[35].mxu0 }
 0x49c   : > { %v1498_v31 = vpop.f32.mrb[36].mxu0 }
 0x49d   : > { %v1505_v33 = vmul.f32 %v2128_v30, %v1498_v31  ;;  %v1943_v34 = vpop.f32.mrb[37].mxu0 }
 0x49e   : > { %v1501_v35 = vpop.f32.mrb[38].mxu0 }
 0x49f   : > { %1507 = vrot.lane.b32.xlu1 %v1505_v33, %s2385_s28  ;;  %v1944_v36 = vpop.f32.mrb[39].mxu0 }
 0x4c4   : > { %v764_v37 = vpop.permute.xlu0 %763 }
 0x4c5   : > { %767 = vst.msk [vmem:[#allocation5] sm:$0xff] %vm766_vm6, %v764_v37 }
 0x4cc   : > { %v888_v38 = vpop.permute.xlu1 %887 }
 0x4cd   : > { %891 = vst.msk [vmem:[#allocation5] sm:$0xff] %vm890_vm7, %v888_v38 }
 0x4d4   : > { %v1012_v0 = vpop.permute.xlu1 %1011 }
 0x4d5   : > { %1015 = vst.msk [vmem:[#allocation5] sm:$0xff] %vm1014_vm8, %v1012_v0 }
 0x4f9   : > { %v1136_v39 = vpop.permute.xlu0 %1135 }
 0x4fa   : > { %1139 = vst.msk [vmem:[#allocation5] sm:$0xff] %vm1138_vm9, %v1136_v39 }
 0x501   : > { %v1260_v40 = vpop.permute.xlu1 %1259 }
 0x502   : > { %1263 = vst.msk [vmem:[#allocation5] sm:$0xff] %vm1262_vm10, %v1260_v40 }
 0x509   : > { %v1384_v41 = vpop.permute.xlu0 %1383 }
 0x50a   : > { %1387 = vst.msk [vmem:[#allocation5] sm:$0xff] %vm1386_vm11, %v1384_v41 }
 0x511   : > { %v1508_v42 = vpop.permute.xlu1 %1507 }
 0x512   : > { %1511 = vst.msk [vmem:[#allocation5] sm:$0xff] %vm1510_vm12, %v1508_v42 }
 0x519   : > { %v1512_v43 = vld [vmem:[#allocation5] sm:$0xff] }
 0x51a   : > { %v1513_v44 = vpack.c.bf16 %v1512_v43, %v1512_v43 }
 0x51c   : > { %1950 = vmatmul.mubr.msk.bf16.vlgmr.msra.gmra.mrb[36].mxu1 %vm362_vm1, %v1513_v44 }
 0x5ef   : > { %v1575_v46 = vpop.f32.mrb[36].mxu1 }
 0x5f0   : > { %v1576_v47 = vadd.f32 %v1773_v45, %v1575_v46  ;;  %v1951_v48 = vpop.f32.mrb[37].mxu1 }
 0x5f1   : > { %v1578_v49 = vpop.f32.mrb[38].mxu1 }
 0x5f2   : > { %v1952_v50 = vpop.f32.mrb[39].mxu1  ;;  %1581 = vst.msk [vmem:[%s338_s13] sm:$0xff] %vm362_vm1, %v1576_v47 }
 0x5f3   : > { %2284 = shalt.err (!%p2281_p8)
}
 0x5f4   : > { %s2285_s1 = scalar_lea.hbm %s2861_s8, 128  ;;  %s2289_s29 = scalar_lea.hbm %s2917_s6, 256 }
 0x5f5   : > { %p2286_p3 = scmp.ne.s32.totalorder %s2861_s8, %s2285_s1  ;;  %p2290_p13 = scmp.lt.u32.totalorder %s2861_s8, %s2917_s6 }
 0x5f6   : > { %p2291_p12 = scmp.lt.u32.totalorder %s2289_s29, %s2285_s1  ;;  %p2293_p2 = scmp.lt.u32.totalorder %s2285_s1, %s2861_s8 }
 0x5f7   : > { %p2287_p11 = pnand %p2286_p3, %p2938_p9 }
 0x5f8   : > { %p2292_p4 = por %p2291_p12, %p2290_p13 }
 0x5f9   : > { %p2288_p6 = pneg %p2287_p11 }
 0x5fa   : > { %p2294_p10 = por %p2293_p2, %p2292_p4 }
 0x5fc   : > { %p2295_p1 = pnand %p2294_p10, %p2288_p6 }
 0x5fe   : > { %2298 = shalt.err (!%p2295_p1)
}
 0x5ff   : > { %1971 = dma.vmem_to_hbm [thread:$0]  (%p2938_p9), %s2863_s9, 128, %s2861_s8, %s1583_s24  }
 0x600 PF: > { %s1609_s13 = sand.u32 1, %s2341_s21   ;;  %p2939_p0 = scmp.ne.s32.totalorder %s2934_s19, 0 }
 0x601   : > { %p2940_p7 = scmp.ge.s32.totalorder %s2361_s26, 2  ;;  %s1610_s11 = scalar_lea.sflag [#allocation8], %s1609_s13 }
 0x603   : > { %p1991_p5 = pnand %p2940_p7, %p2939_p0 }
 0x605   : > { %2336 = dma.done.wait (!%p1991_p5), %s1610_s11, 128  }
 0x606   : > { %2338 = vsyncadd (!%p1991_p5), %s1610_s11, 4294967168  ;;  %s24_s26 = sadd.s32 1, %s2361_s26   ;;  %s2941_s21 = smov %s2345_s22 }
 0x607   : > { %p21_p8 = scmp.ge.s32.totalorder %s24_s26, 4   ;;  %s2942_s22 = smov %s2349_s23 }
 0x608   : > { %s2943_s23 = smov %s2610_s17  ;;  %s2944_s24 = smov %s2357_s25 }
 0x609   : > { %s2945_s25 = smov %s2947_s18  ;;  %23 = sbr.rel (!%p21_p8) target bundleno = 10 (0xa), region = 110 }
 0x610   :  { %1615 = vsyncpa [#allocation7], 1 }
 0x611   :  { %1617 = vsyncpa [#allocation7 + $0x1], 1 }
 0x612   :  { %1618 = vsyncpa [#allocation10], 1 }
 0x613   :  { %1619 = vsyncpa [#allocation13], 1 }
 0x614   :  { %1620 = vsyncpa [#allocation8], 1 }
 0x615   :  { %1622 = vsyncpa [#allocation8 + $0x1], 1 }

</bundles_post_ra>
